<compile_context>
chip_gen: v7x
topology: tpu7x:2x2x1
jax: 0.10.0
libtpu: 0.0.40
codegen_flags: <defaults>
</compile_context>

<pallas_src>
import math

import jax
import jax.numpy as jnp
from jax import lax
from jax.experimental import pallas as pl
from jax.experimental.pallas import tpu as pltpu

D_MODEL = 32
INPUT_DIM = 1
NHEAD = 4
NUM_LAYERS = 2
OUTPUT_DIM = 1
DIM_FF = 4 * D_MODEL
HEAD_DIM = D_MODEL // NHEAD
LN_EPS = 1e-5
ATTN_SCALE = 1.0 / math.sqrt(HEAD_DIM)
NEG_INF = -1e30


def _layer_norm(x, w, b):
    # PyTorch LayerNorm: biased variance, eps inside the sqrt.
    mu = jnp.mean(x, axis=-1, keepdims=True)
    var = jnp.mean((x - mu) ** 2, axis=-1, keepdims=True)
    return (x - mu) * lax.rsqrt(var + LN_EPS) * w + b


def _make_kernel(seq_len, batch_block):
    """Kernel closure over the static per-grid-block geometry."""
    rows = batch_block * seq_len          # rows of the flattened activation slab

    def kernel(x_ref, pe_ref, emb_w_ref, emb_b_ref,
               inw_ref, inb_ref, ow_ref, ob_ref,
               w1_ref, b1_ref, w2_ref, b2_ref,
               ln1w_ref, ln1b_ref, ln2w_ref, ln2b_ref,
               fcw_ref, fcb_ref, out_ref):
        # ---- embed + positional encoding on the whole (rows, D) slab ----
        # input_dim == 1 -> Linear(1, D) is a broadcasted scale + bias.
        src = x_ref[...] * emb_w_ref[...] + emb_b_ref[...] + pe_ref[...]

        # Block-diagonal batch mask, built once and reused by every layer/head.
        if batch_block > 1:
            ri = lax.broadcasted_iota(jnp.int32, (rows, rows), 0) // seq_len
            ci = lax.broadcasted_iota(jnp.int32, (rows, rows), 1) // seq_len
            same_batch = ri == ci
        else:
            same_batch = None

        for l in range(NUM_LAYERS):
            inw = inw_ref[l]      # (D, 3D)
            inb = inb_ref[l]      # (1, 3D)
            ow = ow_ref[l]        # (D, D)
            ob = ob_ref[l]        # (1, D)
            w1 = w1_ref[l]        # (D, FF)
            b1 = b1_ref[l]        # (1, FF)
            w2 = w2_ref[l]        # (FF, D)
            b2 = b2_ref[l]        # (1, D)
            ln1w = ln1w_ref[l]; ln1b = ln1b_ref[l]
            ln2w = ln2w_ref[l]; ln2b = ln2b_ref[l]

            # --- multi-head self-attention (post-LN block), batch-flattened ---
            qkv = jnp.dot(src, inw, preferred_element_type=jnp.float32) + inb
            q = qkv[:, 0:D_MODEL] * ATTN_SCALE
            k = qkv[:, D_MODEL:2 * D_MODEL]
            v = qkv[:, 2 * D_MODEL:3 * D_MODEL]
            kT = jnp.transpose(k)             # one transpose per layer (not per head)

            head_outs = []
            for h in range(NHEAD):
                sl = slice(h * HEAD_DIM, (h + 1) * HEAD_DIM)
                s = jnp.dot(q[:, sl], kT[sl, :],
                            preferred_element_type=jnp.float32)   # (rows, rows)
                if same_batch is not None:
                    s = jnp.where(same_batch, s, NEG_INF)
                s = s - jnp.max(s, axis=-1, keepdims=True)
                p = jnp.exp(s)
                p = p / jnp.sum(p, axis=-1, keepdims=True)
                head_outs.append(jnp.dot(p, v[:, sl],
                                         preferred_element_type=jnp.float32))
            attn = jnp.concatenate(head_outs, axis=-1)              # (rows, D)
            attn = jnp.dot(attn, ow, preferred_element_type=jnp.float32) + ob
            src = _layer_norm(src + attn, ln1w, ln1b)

            # --- feed-forward (relu) block ---
            ff = jnp.dot(src, w1, preferred_element_type=jnp.float32) + b1
            ff = jnp.maximum(ff, 0.0)
            ff = jnp.dot(ff, w2, preferred_element_type=jnp.float32) + b2
            src = _layer_norm(src + ff, ln2w, ln2b)

        # --- last time step of each batch element via one-hot selector matmul ---
        bi = lax.broadcasted_iota(jnp.int32, (batch_block, rows), 0)
        ci = lax.broadcasted_iota(jnp.int32, (batch_block, rows), 1)
        sel = (ci == bi * seq_len + (seq_len - 1)).astype(jnp.float32)
        last = jnp.dot(sel, src, preferred_element_type=jnp.float32)  # (bb, D)
        out_ref[...] = (jnp.dot(last, fcw_ref[...],
                                preferred_element_type=jnp.float32) + fcb_ref[...])

    return kernel


def _rep_spec(shape):
    """Full-array block replicated to every grid step (small weights)."""
    nd = len(shape)
    return pl.BlockSpec(shape, lambda i, nd=nd: (0,) * nd)


@jax.jit
def transformer_forward(x, params):
    """x: (seq, batch, input_dim=1) -> (batch, output_dim)."""
    S, B, _ = x.shape
    # Two grid blocks when batch splits evenly -> both v7x TensorCores are used
    # (dimension_semantics="parallel"); neutral on v5e/v6e single-core chips.
    num_blocks = 2 if (B % 2 == 0 and B >= 2) else 1
    batch_block = B // num_blocks
    rows = batch_block * S

    # Flatten batch-major: row b*S + s.  PE is pre-expanded in the wrapper.
    x_flat = jnp.transpose(x[:, :, 0]).reshape(B * S, 1)
    pe_flat = jnp.tile(params["pe"][:S], (B, 1))                  # (B*S, D)

    weights = (params["emb_w"], params["emb_b"],
               params["in_w"], params["in_b"], params["out_w"], params["out_b"],
               params["w1"], params["b1"], params["w2"], params["b2"],
               params["ln1w"], params["ln1b"], params["ln2w"], params["ln2b"],
               params["fc_w"], params["fc_b"])

    out = pl.pallas_call(
        _make_kernel(S, batch_block),
        out_shape=jax.ShapeDtypeStruct((num_blocks, batch_block, OUTPUT_DIM),
                                       jnp.float32),
        grid=(num_blocks,),
        in_specs=[pl.BlockSpec((rows, 1), lambda i: (i, 0)),
                  pl.BlockSpec((rows, D_MODEL), lambda i: (i, 0))]
                 + [_rep_spec(w.shape) for w in weights],
        out_specs=pl.BlockSpec((None, batch_block, OUTPUT_DIM),
                               lambda i: (i, 0, 0)),
        compiler_params=pltpu.CompilerParams(
            dimension_semantics=("parallel",),
            vmem_limit_bytes=32 * 1024 * 1024),
    )(x_flat, pe_flat, *weights)
    return out.reshape(B, OUTPUT_DIM)


def init_params(key, max_len=64):
    def pe_table(n, d):
        position = jnp.arange(n, dtype=jnp.float32)[:, None]
        div_term = jnp.exp(jnp.arange(0, d, 2, dtype=jnp.float32)
                           * (-math.log(10000.0) / d))
        pe = jnp.zeros((n, d), jnp.float32)
        pe = pe.at[:, 0::2].set(jnp.sin(position * div_term))
        pe = pe.at[:, 1::2].set(jnp.cos(position * div_term))
        return pe

    keys = jax.random.split(key, 12)
    nrm = lambda k, shape: (0.1 * jax.random.normal(k, shape)).astype(jnp.float32)
    L = NUM_LAYERS
    return dict(
        pe=pe_table(max_len, D_MODEL),
        emb_w=nrm(keys[0], (INPUT_DIM, D_MODEL)),        # Linear(1, D).weight.T
        emb_b=nrm(keys[1], (1, D_MODEL)),
        in_w=nrm(keys[2], (L, D_MODEL, 3 * D_MODEL)),    # in_proj_weight.T per layer
        in_b=nrm(keys[3], (L, 1, 3 * D_MODEL)),
        out_w=nrm(keys[4], (L, D_MODEL, D_MODEL)),       # out_proj.weight.T
        out_b=nrm(keys[5], (L, 1, D_MODEL)),
        w1=nrm(keys[6], (L, D_MODEL, DIM_FF)),           # linear1.weight.T
        b1=nrm(keys[7], (L, 1, DIM_FF)),
        w2=nrm(keys[8], (L, DIM_FF, D_MODEL)),           # linear2.weight.T
        b2=nrm(keys[9], (L, 1, D_MODEL)),
        ln1w=jnp.ones((L, 1, D_MODEL), jnp.float32),
        ln1b=jnp.zeros((L, 1, D_MODEL), jnp.float32),
        ln2w=jnp.ones((L, 1, D_MODEL), jnp.float32),
        ln2b=jnp.zeros((L, 1, D_MODEL), jnp.float32),
        fc_w=nrm(keys[10], (D_MODEL, OUTPUT_DIM)),       # fc.weight.T
        fc_b=nrm(keys[11], (1, OUTPUT_DIM)),
    )


def reference_forward(x, params):
    """Pure-JAX reference mirroring the PyTorch forward (eval mode)."""
    S, B, _ = x.shape
    pe = params["pe"][:S]

    def ln(t, w, b):
        mu = jnp.mean(t, axis=-1, keepdims=True)
        var = jnp.mean((t - mu) ** 2, axis=-1, keepdims=True)
        return (t - mu) / jnp.sqrt(var + LN_EPS) * w + b

    src = jnp.einsum("sbi,id->sbd", x, params["emb_w"]) + params["emb_b"][0]
    src = src + pe[:, None, :]
    for l in range(NUM_LAYERS):
        qkv = jnp.einsum("sbd,de->sbe", src, params["in_w"][l]) + params["in_b"][l][0]
        q, k, v = jnp.split(qkv, 3, axis=-1)
        heads = lambda t: t.reshape(S, B, NHEAD, HEAD_DIM).transpose(1, 2, 0, 3)
        qh, kh, vh = heads(q), heads(k), heads(v)
        scores = jnp.einsum("bhsd,bhtd->bhst", qh, kh) / math.sqrt(HEAD_DIM)
        p = jax.nn.softmax(scores, axis=-1)
        o = jnp.einsum("bhst,bhtd->bhsd", p, vh)
        o = o.transpose(2, 0, 1, 3).reshape(S, B, D_MODEL)
        attn = jnp.einsum("sbd,de->sbe", o, params["out_w"][l]) + params["out_b"][l][0]
        src = ln(src + attn, params["ln1w"][l][0], params["ln1b"][l][0])
        ff = jax.nn.relu(jnp.einsum("sbd,df->sbf", src, params["w1"][l])
                         + params["b1"][l][0])
        ff = jnp.einsum("sbf,fd->sbd", ff, params["w2"][l]) + params["b2"][l][0]
        src = ln(src + ff, params["ln2w"][l][0], params["ln2b"][l][0])
    return src[-1] @ params["fc_w"] + params["fc_b"][0]


if __name__ == "__main__":
    key = jax.random.PRNGKey(0)
    kx, kp = jax.random.split(key)
    params = init_params(kp)

    # Primary test shape (module-consistent): seq=8, batch=2, input_dim=1.
    S, B = 8, 2
    x = jax.random.normal(kx, (S, B, INPUT_DIM), dtype=jnp.float32)
    out = jax.block_until_ready(transformer_forward(x, params))
    ref = reference_forward(x, params)
    assert out.shape == (B, OUTPUT_DIM), out.shape
    assert jnp.allclose(out, ref, atol=1e-4, rtol=1e-4), (out, ref)

    # Second shape exercises the batch-flattened (masked) attention path with
    # 2 batch elements per grid block.
    S2, B2 = 8, 4
    x2 = jax.random.normal(jax.random.PRNGKey(1), (S2, B2, INPUT_DIM),
                           dtype=jnp.float32)
    out2 = jax.block_until_ready(transformer_forward(x2, params))
    ref2 = reference_forward(x2, params)
    assert jnp.allclose(out2, ref2, atol=1e-4, rtol=1e-4), (out2, ref2)

    print("KERNEL_OK")
</pallas_src>

<mosaic_0001>
module attributes {stable_mosaic.version = 11 : i64} {
  func.func @kernel(%arg0: i32, %arg1: memref<8x1xf32, #tpu.memory_space<vmem>>, %arg2: memref<8x32xf32, #tpu.memory_space<vmem>>, %arg3: memref<1x32xf32, #tpu.memory_space<vmem>>, %arg4: memref<1x32xf32, #tpu.memory_space<vmem>>, %arg5: memref<2x32x96xf32, #tpu.memory_space<vmem>>, %arg6: memref<2x1x96xf32, #tpu.memory_space<vmem>>, %arg7: memref<2x32x32xf32, #tpu.memory_space<vmem>>, %arg8: memref<2x1x32xf32, #tpu.memory_space<vmem>>, %arg9: memref<2x32x128xf32, #tpu.memory_space<vmem>>, %arg10: memref<2x1x128xf32, #tpu.memory_space<vmem>>, %arg11: memref<2x128x32xf32, #tpu.memory_space<vmem>>, %arg12: memref<2x1x32xf32, #tpu.memory_space<vmem>>, %arg13: memref<2x1x32xf32, #tpu.memory_space<vmem>>, %arg14: memref<2x1x32xf32, #tpu.memory_space<vmem>>, %arg15: memref<2x1x32xf32, #tpu.memory_space<vmem>>, %arg16: memref<2x1x32xf32, #tpu.memory_space<vmem>>, %arg17: memref<32x1xf32, #tpu.memory_space<vmem>>, %arg18: memref<1x1xf32, #tpu.memory_space<vmem>>, %arg19: memref<1x1x1xf32, #tpu.memory_space<vmem>>) attributes {dimension_semantics = [#tpu.dimension_semantics<parallel>], iteration_bounds = array<i64: 2>, scalar_prefetch = 0 : i64, scratch_operands = 0 : i64, tpu.core_type = #tpu.core_type<tc>, window_params = [{transform_indices = @transform_0, window_bounds = array<i64: 8, 1>}, {transform_indices = @transform_1, window_bounds = array<i64: 8, 32>}, {pipeline_mode = #tpu.pipeline_mode<synchronous>, transform_indices = @transform_2, window_bounds = array<i64: 1, 32>}, {pipeline_mode = #tpu.pipeline_mode<synchronous>, transform_indices = @transform_3, window_bounds = array<i64: 1, 32>}, {pipeline_mode = #tpu.pipeline_mode<synchronous>, transform_indices = @transform_4, window_bounds = array<i64: 2, 32, 96>}, {pipeline_mode = #tpu.pipeline_mode<synchronous>, transform_indices = @transform_5, window_bounds = array<i64: 2, 1, 96>}, {pipeline_mode = #tpu.pipeline_mode<synchronous>, transform_indices = @transform_6, window_bounds = array<i64: 2, 32, 32>}, {pipeline_mode = #tpu.pipeline_mode<synchronous>, transform_indices = @transform_7, window_bounds = array<i64: 2, 1, 32>}, {pipeline_mode = #tpu.pipeline_mode<synchronous>, transform_indices = @transform_8, window_bounds = array<i64: 2, 32, 128>}, {pipeline_mode = #tpu.pipeline_mode<synchronous>, transform_indices = @transform_9, window_bounds = array<i64: 2, 1, 128>}, {pipeline_mode = #tpu.pipeline_mode<synchronous>, transform_indices = @transform_10, window_bounds = array<i64: 2, 128, 32>}, {pipeline_mode = #tpu.pipeline_mode<synchronous>, transform_indices = @transform_11, window_bounds = array<i64: 2, 1, 32>}, {pipeline_mode = #tpu.pipeline_mode<synchronous>, transform_indices = @transform_12, window_bounds = array<i64: 2, 1, 32>}, {pipeline_mode = #tpu.pipeline_mode<synchronous>, transform_indices = @transform_13, window_bounds = array<i64: 2, 1, 32>}, {pipeline_mode = #tpu.pipeline_mode<synchronous>, transform_indices = @transform_14, window_bounds = array<i64: 2, 1, 32>}, {pipeline_mode = #tpu.pipeline_mode<synchronous>, transform_indices = @transform_15, window_bounds = array<i64: 2, 1, 32>}, {pipeline_mode = #tpu.pipeline_mode<synchronous>, transform_indices = @transform_16, window_bounds = array<i64: 32, 1>}, {pipeline_mode = #tpu.pipeline_mode<synchronous>, transform_indices = @transform_17, window_bounds = array<i64: 1, 1>}, {transform_indices = @transform_18, window_bounds = array<i64: 1, 1, 1>}]} {
    %c0 = arith.constant 0 : index
    %c0_0 = arith.constant 0 : index
    %0 = vector.load %arg1[%c0, %c0_0] : memref<8x1xf32, #tpu.memory_space<vmem>>, vector<8x1xf32>
    %c0_1 = arith.constant 0 : index
    %c0_2 = arith.constant 0 : index
    %1 = vector.load %arg3[%c0_1, %c0_2] : memref<1x32xf32, #tpu.memory_space<vmem>>, vector<1x32xf32>
    %2 = vector.broadcast %0 : vector<8x1xf32> to vector<8x32xf32>
    %3 = vector.broadcast %1 : vector<1x32xf32> to vector<8x32xf32>
    %4 = arith.mulf %2, %3 : vector<8x32xf32>
    %c0_3 = arith.constant 0 : index
    %c0_4 = arith.constant 0 : index
    %5 = vector.load %arg4[%c0_3, %c0_4] : memref<1x32xf32, #tpu.memory_space<vmem>>, vector<1x32xf32>
    %6 = vector.broadcast %5 : vector<1x32xf32> to vector<8x32xf32>
    %7 = arith.addf %4, %6 : vector<8x32xf32>
    %c0_5 = arith.constant 0 : index
    %c0_6 = arith.constant 0 : index
    %8 = vector.load %arg2[%c0_5, %c0_6] : memref<8x32xf32, #tpu.memory_space<vmem>>, vector<8x32xf32>
    %9 = arith.addf %7, %8 : vector<8x32xf32>
    %c0_7 = arith.constant 0 : index
    %c0_8 = arith.constant 0 : index
    %c0_9 = arith.constant 0 : index
    %10 = vector.load %arg5[%c0_7, %c0_8, %c0_9] : memref<2x32x96xf32, #tpu.memory_space<vmem>>, vector<1x32x96xf32>
    %11 = vector.shape_cast %10 : vector<1x32x96xf32> to vector<32x96xf32>
    %c0_10 = arith.constant 0 : index
    %c0_11 = arith.constant 0 : index
    %c0_12 = arith.constant 0 : index
    %12 = vector.load %arg6[%c0_10, %c0_11, %c0_12] : memref<2x1x96xf32, #tpu.memory_space<vmem>>, vector<1x1x96xf32>
    %13 = vector.shape_cast %12 : vector<1x1x96xf32> to vector<1x96xf32>
    %c0_13 = arith.constant 0 : index
    %c0_14 = arith.constant 0 : index
    %c0_15 = arith.constant 0 : index
    %14 = vector.load %arg7[%c0_13, %c0_14, %c0_15] : memref<2x32x32xf32, #tpu.memory_space<vmem>>, vector<1x32x32xf32>
    %15 = vector.shape_cast %14 : vector<1x32x32xf32> to vector<32x32xf32>
    %c0_16 = arith.constant 0 : index
    %c0_17 = arith.constant 0 : index
    %c0_18 = arith.constant 0 : index
    %16 = vector.load %arg8[%c0_16, %c0_17, %c0_18] : memref<2x1x32xf32, #tpu.memory_space<vmem>>, vector<1x1x32xf32>
    %17 = vector.shape_cast %16 : vector<1x1x32xf32> to vector<1x32xf32>
    %c0_19 = arith.constant 0 : index
    %c0_20 = arith.constant 0 : index
    %c0_21 = arith.constant 0 : index
    %18 = vector.load %arg9[%c0_19, %c0_20, %c0_21] : memref<2x32x128xf32, #tpu.memory_space<vmem>>, vector<1x32x128xf32>
    %19 = vector.shape_cast %18 : vector<1x32x128xf32> to vector<32x128xf32>
    %c0_22 = arith.constant 0 : index
    %c0_23 = arith.constant 0 : index
    %c0_24 = arith.constant 0 : index
    %20 = vector.load %arg10[%c0_22, %c0_23, %c0_24] : memref<2x1x128xf32, #tpu.memory_space<vmem>>, vector<1x1x128xf32>
    %21 = vector.shape_cast %20 : vector<1x1x128xf32> to vector<1x128xf32>
    %c0_25 = arith.constant 0 : index
    %c0_26 = arith.constant 0 : index
    %c0_27 = arith.constant 0 : index
    %22 = vector.load %arg11[%c0_25, %c0_26, %c0_27] : memref<2x128x32xf32, #tpu.memory_space<vmem>>, vector<1x128x32xf32>
    %23 = vector.shape_cast %22 : vector<1x128x32xf32> to vector<128x32xf32>
    %c0_28 = arith.constant 0 : index
    %c0_29 = arith.constant 0 : index
    %c0_30 = arith.constant 0 : index
    %24 = vector.load %arg12[%c0_28, %c0_29, %c0_30] : memref<2x1x32xf32, #tpu.memory_space<vmem>>, vector<1x1x32xf32>
    %25 = vector.shape_cast %24 : vector<1x1x32xf32> to vector<1x32xf32>
    %c0_31 = arith.constant 0 : index
    %c0_32 = arith.constant 0 : index
    %c0_33 = arith.constant 0 : index
    %26 = vector.load %arg13[%c0_31, %c0_32, %c0_33] : memref<2x1x32xf32, #tpu.memory_space<vmem>>, vector<1x1x32xf32>
    %27 = vector.shape_cast %26 : vector<1x1x32xf32> to vector<1x32xf32>
    %c0_34 = arith.constant 0 : index
    %c0_35 = arith.constant 0 : index
    %c0_36 = arith.constant 0 : index
    %28 = vector.load %arg14[%c0_34, %c0_35, %c0_36] : memref<2x1x32xf32, #tpu.memory_space<vmem>>, vector<1x1x32xf32>
    %29 = vector.shape_cast %28 : vector<1x1x32xf32> to vector<1x32xf32>
    %c0_37 = arith.constant 0 : index
    %c0_38 = arith.constant 0 : index
    %c0_39 = arith.constant 0 : index
    %30 = vector.load %arg15[%c0_37, %c0_38, %c0_39] : memref<2x1x32xf32, #tpu.memory_space<vmem>>, vector<1x1x32xf32>
    %31 = vector.shape_cast %30 : vector<1x1x32xf32> to vector<1x32xf32>
    %c0_40 = arith.constant 0 : index
    %c0_41 = arith.constant 0 : index
    %c0_42 = arith.constant 0 : index
    %32 = vector.load %arg16[%c0_40, %c0_41, %c0_42] : memref<2x1x32xf32, #tpu.memory_space<vmem>>, vector<1x1x32xf32>
    %33 = vector.shape_cast %32 : vector<1x1x32xf32> to vector<1x32xf32>
    %cst = arith.constant dense<0.000000e+00> : vector<8x96xf32>
    %34 = tpu.matmul %9, %11, %cst {dimension_numbers = #tpu.dot_dimension_numbers<[1], [0], [0], [1], [0, 0, 1, 1], [], []>} : vector<8x32xf32>, vector<32x96xf32>, vector<8x96xf32> -> vector<8x96xf32>
    %35 = vector.broadcast %13 : vector<1x96xf32> to vector<8x96xf32>
    %36 = arith.addf %34, %35 : vector<8x96xf32>
    %37 = vector.extract_strided_slice %36 {offsets = [0, 0], sizes = [8, 32], strides = [1, 1]} : vector<8x96xf32> to vector<8x32xf32>
    %cst_43 = arith.constant 0.353553385 : f32
    %38 = vector.broadcast %cst_43 : f32 to vector<8x32xf32>
    %39 = arith.mulf %37, %38 : vector<8x32xf32>
    %40 = vector.extract_strided_slice %36 {offsets = [0, 32], sizes = [8, 32], strides = [1, 1]} : vector<8x96xf32> to vector<8x32xf32>
    %41 = vector.extract_strided_slice %36 {offsets = [0, 64], sizes = [8, 32], strides = [1, 1]} : vector<8x96xf32> to vector<8x32xf32>
    %42 = tpu.transpose %40, [1, 0] : vector<8x32xf32> -> vector<32x8xf32>
    %43 = vector.extract_strided_slice %39 {offsets = [0, 0], sizes = [8, 8], strides = [1, 1]} : vector<8x32xf32> to vector<8x8xf32>
    %44 = vector.extract_strided_slice %42 {offsets = [0, 0], sizes = [8, 8], strides = [1, 1]} : vector<32x8xf32> to vector<8x8xf32>
    %cst_44 = arith.constant dense<0.000000e+00> : vector<8x8xf32>
    %45 = tpu.matmul %43, %44, %cst_44 {dimension_numbers = #tpu.dot_dimension_numbers<[1], [0], [0], [1], [0, 0, 1, 1], [], []>} : vector<8x8xf32>, vector<8x8xf32>, vector<8x8xf32> -> vector<8x8xf32>
    %cst_45 = arith.constant dense<0xFF800000> : vector<8xf32>
    %46 = vector.multi_reduction <maximumf>, %45, %cst_45 [1] : vector<8x8xf32> to vector<8xf32>
    %47 = vector.shape_cast %46 : vector<8xf32> to vector<8x1xf32>
    %48 = vector.broadcast %47 : vector<8x1xf32> to vector<8x8xf32>
    %49 = arith.subf %45, %48 : vector<8x8xf32>
    %50 = math.exp %49 : vector<8x8xf32>
    %cst_46 = arith.constant dense<0.000000e+00> : vector<8xf32>
    %51 = vector.multi_reduction <add>, %50, %cst_46 [1] : vector<8x8xf32> to vector<8xf32>
    %52 = vector.shape_cast %51 : vector<8xf32> to vector<8x1xf32>
    %53 = vector.broadcast %52 : vector<8x1xf32> to vector<8x8xf32>
    %54 = arith.divf %50, %53 : vector<8x8xf32>
    %55 = vector.extract_strided_slice %41 {offsets = [0, 0], sizes = [8, 8], strides = [1, 1]} : vector<8x32xf32> to vector<8x8xf32>
    %cst_47 = arith.constant dense<0.000000e+00> : vector<8x8xf32>
    %56 = tpu.matmul %54, %55, %cst_47 {dimension_numbers = #tpu.dot_dimension_numbers<[1], [0], [0], [1], [0, 0, 1, 1], [], []>} : vector<8x8xf32>, vector<8x8xf32>, vector<8x8xf32> -> vector<8x8xf32>
    %57 = vector.extract_strided_slice %39 {offsets = [0, 8], sizes = [8, 8], strides = [1, 1]} : vector<8x32xf32> to vector<8x8xf32>
    %58 = vector.extract_strided_slice %42 {offsets = [8, 0], sizes = [8, 8], strides = [1, 1]} : vector<32x8xf32> to vector<8x8xf32>
    %cst_48 = arith.constant dense<0.000000e+00> : vector<8x8xf32>
    %59 = tpu.matmul %57, %58, %cst_48 {dimension_numbers = #tpu.dot_dimension_numbers<[1], [0], [0], [1], [0, 0, 1, 1], [], []>} : vector<8x8xf32>, vector<8x8xf32>, vector<8x8xf32> -> vector<8x8xf32>
    %cst_49 = arith.constant dense<0xFF800000> : vector<8xf32>
    %60 = vector.multi_reduction <maximumf>, %59, %cst_49 [1] : vector<8x8xf32> to vector<8xf32>
    %61 = vector.shape_cast %60 : vector<8xf32> to vector<8x1xf32>
    %62 = vector.broadcast %61 : vector<8x1xf32> to vector<8x8xf32>
    %63 = arith.subf %59, %62 : vector<8x8xf32>
    %64 = math.exp %63 : vector<8x8xf32>
    %cst_50 = arith.constant dense<0.000000e+00> : vector<8xf32>
    %65 = vector.multi_reduction <add>, %64, %cst_50 [1] : vector<8x8xf32> to vector<8xf32>
    %66 = vector.shape_cast %65 : vector<8xf32> to vector<8x1xf32>
    %67 = vector.broadcast %66 : vector<8x1xf32> to vector<8x8xf32>
    %68 = arith.divf %64, %67 : vector<8x8xf32>
    %69 = vector.extract_strided_slice %41 {offsets = [0, 8], sizes = [8, 8], strides = [1, 1]} : vector<8x32xf32> to vector<8x8xf32>
    %cst_51 = arith.constant dense<0.000000e+00> : vector<8x8xf32>
    %70 = tpu.matmul %68, %69, %cst_51 {dimension_numbers = #tpu.dot_dimension_numbers<[1], [0], [0], [1], [0, 0, 1, 1], [], []>} : vector<8x8xf32>, vector<8x8xf32>, vector<8x8xf32> -> vector<8x8xf32>
    %71 = vector.extract_strided_slice %39 {offsets = [0, 16], sizes = [8, 8], strides = [1, 1]} : vector<8x32xf32> to vector<8x8xf32>
    %72 = vector.extract_strided_slice %42 {offsets = [16, 0], sizes = [8, 8], strides = [1, 1]} : vector<32x8xf32> to vector<8x8xf32>
    %cst_52 = arith.constant dense<0.000000e+00> : vector<8x8xf32>
    %73 = tpu.matmul %71, %72, %cst_52 {dimension_numbers = #tpu.dot_dimension_numbers<[1], [0], [0], [1], [0, 0, 1, 1], [], []>} : vector<8x8xf32>, vector<8x8xf32>, vector<8x8xf32> -> vector<8x8xf32>
    %cst_53 = arith.constant dense<0xFF800000> : vector<8xf32>
    %74 = vector.multi_reduction <maximumf>, %73, %cst_53 [1] : vector<8x8xf32> to vector<8xf32>
    %75 = vector.shape_cast %74 : vector<8xf32> to vector<8x1xf32>
    %76 = vector.broadcast %75 : vector<8x1xf32> to vector<8x8xf32>
    %77 = arith.subf %73, %76 : vector<8x8xf32>
    %78 = math.exp %77 : vector<8x8xf32>
    %cst_54 = arith.constant dense<0.000000e+00> : vector<8xf32>
    %79 = vector.multi_reduction <add>, %78, %cst_54 [1] : vector<8x8xf32> to vector<8xf32>
    %80 = vector.shape_cast %79 : vector<8xf32> to vector<8x1xf32>
    %81 = vector.broadcast %80 : vector<8x1xf32> to vector<8x8xf32>
    %82 = arith.divf %78, %81 : vector<8x8xf32>
    %83 = vector.extract_strided_slice %41 {offsets = [0, 16], sizes = [8, 8], strides = [1, 1]} : vector<8x32xf32> to vector<8x8xf32>
    %cst_55 = arith.constant dense<0.000000e+00> : vector<8x8xf32>
    %84 = tpu.matmul %82, %83, %cst_55 {dimension_numbers = #tpu.dot_dimension_numbers<[1], [0], [0], [1], [0, 0, 1, 1], [], []>} : vector<8x8xf32>, vector<8x8xf32>, vector<8x8xf32> -> vector<8x8xf32>
    %85 = vector.extract_strided_slice %39 {offsets = [0, 24], sizes = [8, 8], strides = [1, 1]} : vector<8x32xf32> to vector<8x8xf32>
    %86 = vector.extract_strided_slice %42 {offsets = [24, 0], sizes = [8, 8], strides = [1, 1]} : vector<32x8xf32> to vector<8x8xf32>
    %cst_56 = arith.constant dense<0.000000e+00> : vector<8x8xf32>
    %87 = tpu.matmul %85, %86, %cst_56 {dimension_numbers = #tpu.dot_dimension_numbers<[1], [0], [0], [1], [0, 0, 1, 1], [], []>} : vector<8x8xf32>, vector<8x8xf32>, vector<8x8xf32> -> vector<8x8xf32>
    %cst_57 = arith.constant dense<0xFF800000> : vector<8xf32>
    %88 = vector.multi_reduction <maximumf>, %87, %cst_57 [1] : vector<8x8xf32> to vector<8xf32>
    %89 = vector.shape_cast %88 : vector<8xf32> to vector<8x1xf32>
    %90 = vector.broadcast %89 : vector<8x1xf32> to vector<8x8xf32>
    %91 = arith.subf %87, %90 : vector<8x8xf32>
    %92 = math.exp %91 : vector<8x8xf32>
    %cst_58 = arith.constant dense<0.000000e+00> : vector<8xf32>
    %93 = vector.multi_reduction <add>, %92, %cst_58 [1] : vector<8x8xf32> to vector<8xf32>
    %94 = vector.shape_cast %93 : vector<8xf32> to vector<8x1xf32>
    %95 = vector.broadcast %94 : vector<8x1xf32> to vector<8x8xf32>
    %96 = arith.divf %92, %95 : vector<8x8xf32>
    %97 = vector.extract_strided_slice %41 {offsets = [0, 24], sizes = [8, 8], strides = [1, 1]} : vector<8x32xf32> to vector<8x8xf32>
    %cst_59 = arith.constant dense<0.000000e+00> : vector<8x8xf32>
    %98 = tpu.matmul %96, %97, %cst_59 {dimension_numbers = #tpu.dot_dimension_numbers<[1], [0], [0], [1], [0, 0, 1, 1], [], []>} : vector<8x8xf32>, vector<8x8xf32>, vector<8x8xf32> -> vector<8x8xf32>
    %99 = tpu.concatenate %56, %70, %84, %98 in 1 : vector<8x8xf32>, vector<8x8xf32>, vector<8x8xf32>, vector<8x8xf32> -> vector<8x32xf32>
    %cst_60 = arith.constant dense<0.000000e+00> : vector<8x32xf32>
    %100 = tpu.matmul %99, %15, %cst_60 {dimension_numbers = #tpu.dot_dimension_numbers<[1], [0], [0], [1], [0, 0, 1, 1], [], []>} : vector<8x32xf32>, vector<32x32xf32>, vector<8x32xf32> -> vector<8x32xf32>
    %101 = vector.broadcast %17 : vector<1x32xf32> to vector<8x32xf32>
    %102 = arith.addf %100, %101 : vector<8x32xf32>
    %103 = arith.addf %9, %102 : vector<8x32xf32>
    %cst_61 = arith.constant dense<0.000000e+00> : vector<8xf32>
    %104 = vector.multi_reduction <add>, %103, %cst_61 [1] : vector<8x32xf32> to vector<8xf32>
    %105 = vector.shape_cast %104 : vector<8xf32> to vector<8x1xf32>
    %cst_62 = arith.constant 3.200000e+01 : f32
    %106 = vector.broadcast %cst_62 : f32 to vector<8x1xf32>
    %107 = arith.divf %105, %106 : vector<8x1xf32>
    %108 = vector.broadcast %107 : vector<8x1xf32> to vector<8x32xf32>
    %109 = arith.subf %103, %108 : vector<8x32xf32>
    %110 = arith.mulf %109, %109 : vector<8x32xf32>
    %cst_63 = arith.constant dense<0.000000e+00> : vector<8xf32>
    %111 = vector.multi_reduction <add>, %110, %cst_63 [1] : vector<8x32xf32> to vector<8xf32>
    %112 = vector.shape_cast %111 : vector<8xf32> to vector<8x1xf32>
    %cst_64 = arith.constant 3.200000e+01 : f32
    %113 = vector.broadcast %cst_64 : f32 to vector<8x1xf32>
    %114 = arith.divf %112, %113 : vector<8x1xf32>
    %115 = vector.broadcast %107 : vector<8x1xf32> to vector<8x32xf32>
    %116 = arith.subf %103, %115 : vector<8x32xf32>
    %cst_65 = arith.constant 9.99999974E-6 : f32
    %117 = vector.broadcast %cst_65 : f32 to vector<8x1xf32>
    %118 = arith.addf %114, %117 : vector<8x1xf32>
    %119 = math.rsqrt %118 : vector<8x1xf32>
    %120 = vector.broadcast %119 : vector<8x1xf32> to vector<8x32xf32>
    %121 = arith.mulf %116, %120 : vector<8x32xf32>
    %122 = vector.broadcast %27 : vector<1x32xf32> to vector<8x32xf32>
    %123 = arith.mulf %121, %122 : vector<8x32xf32>
    %124 = vector.broadcast %29 : vector<1x32xf32> to vector<8x32xf32>
    %125 = arith.addf %123, %124 : vector<8x32xf32>
    %cst_66 = arith.constant dense<0.000000e+00> : vector<8x128xf32>
    %126 = tpu.matmul %125, %19, %cst_66 {dimension_numbers = #tpu.dot_dimension_numbers<[1], [0], [0], [1], [0, 0, 1, 1], [], []>} : vector<8x32xf32>, vector<32x128xf32>, vector<8x128xf32> -> vector<8x128xf32>
    %127 = vector.broadcast %21 : vector<1x128xf32> to vector<8x128xf32>
    %128 = arith.addf %126, %127 : vector<8x128xf32>
    %cst_67 = arith.constant 0.000000e+00 : f32
    %129 = vector.broadcast %cst_67 : f32 to vector<8x128xf32>
    %130 = arith.maximumf %128, %129 : vector<8x128xf32>
    %cst_68 = arith.constant dense<0.000000e+00> : vector<8x32xf32>
    %131 = tpu.matmul %130, %23, %cst_68 {dimension_numbers = #tpu.dot_dimension_numbers<[1], [0], [0], [1], [0, 0, 1, 1], [], []>} : vector<8x128xf32>, vector<128x32xf32>, vector<8x32xf32> -> vector<8x32xf32>
    %132 = vector.broadcast %25 : vector<1x32xf32> to vector<8x32xf32>
    %133 = arith.addf %131, %132 : vector<8x32xf32>
    %134 = arith.addf %125, %133 : vector<8x32xf32>
    %cst_69 = arith.constant dense<0.000000e+00> : vector<8xf32>
    %135 = vector.multi_reduction <add>, %134, %cst_69 [1] : vector<8x32xf32> to vector<8xf32>
    %136 = vector.shape_cast %135 : vector<8xf32> to vector<8x1xf32>
    %cst_70 = arith.constant 3.200000e+01 : f32
    %137 = vector.broadcast %cst_70 : f32 to vector<8x1xf32>
    %138 = arith.divf %136, %137 : vector<8x1xf32>
    %139 = vector.broadcast %138 : vector<8x1xf32> to vector<8x32xf32>
    %140 = arith.subf %134, %139 : vector<8x32xf32>
    %141 = arith.mulf %140, %140 : vector<8x32xf32>
    %cst_71 = arith.constant dense<0.000000e+00> : vector<8xf32>
    %142 = vector.multi_reduction <add>, %141, %cst_71 [1] : vector<8x32xf32> to vector<8xf32>
    %143 = vector.shape_cast %142 : vector<8xf32> to vector<8x1xf32>
    %cst_72 = arith.constant 3.200000e+01 : f32
    %144 = vector.broadcast %cst_72 : f32 to vector<8x1xf32>
    %145 = arith.divf %143, %144 : vector<8x1xf32>
    %146 = vector.broadcast %138 : vector<8x1xf32> to vector<8x32xf32>
    %147 = arith.subf %134, %146 : vector<8x32xf32>
    %cst_73 = arith.constant 9.99999974E-6 : f32
    %148 = vector.broadcast %cst_73 : f32 to vector<8x1xf32>
    %149 = arith.addf %145, %148 : vector<8x1xf32>
    %150 = math.rsqrt %149 : vector<8x1xf32>
    %151 = vector.broadcast %150 : vector<8x1xf32> to vector<8x32xf32>
    %152 = arith.mulf %147, %151 : vector<8x32xf32>
    %153 = vector.broadcast %31 : vector<1x32xf32> to vector<8x32xf32>
    %154 = arith.mulf %152, %153 : vector<8x32xf32>
    %155 = vector.broadcast %33 : vector<1x32xf32> to vector<8x32xf32>
    %156 = arith.addf %154, %155 : vector<8x32xf32>
    %c1 = arith.constant 1 : index
    %c0_74 = arith.constant 0 : index
    %c0_75 = arith.constant 0 : index
    %157 = vector.load %arg5[%c1, %c0_74, %c0_75] : memref<2x32x96xf32, #tpu.memory_space<vmem>>, vector<1x32x96xf32>
    %158 = vector.shape_cast %157 : vector<1x32x96xf32> to vector<32x96xf32>
    %c1_76 = arith.constant 1 : index
    %c0_77 = arith.constant 0 : index
    %c0_78 = arith.constant 0 : index
    %159 = vector.load %arg6[%c1_76, %c0_77, %c0_78] : memref<2x1x96xf32, #tpu.memory_space<vmem>>, vector<1x1x96xf32>
    %160 = vector.shape_cast %159 : vector<1x1x96xf32> to vector<1x96xf32>
    %c1_79 = arith.constant 1 : index
    %c0_80 = arith.constant 0 : index
    %c0_81 = arith.constant 0 : index
    %161 = vector.load %arg7[%c1_79, %c0_80, %c0_81] : memref<2x32x32xf32, #tpu.memory_space<vmem>>, vector<1x32x32xf32>
    %162 = vector.shape_cast %161 : vector<1x32x32xf32> to vector<32x32xf32>
    %c1_82 = arith.constant 1 : index
    %c0_83 = arith.constant 0 : index
    %c0_84 = arith.constant 0 : index
    %163 = vector.load %arg8[%c1_82, %c0_83, %c0_84] : memref<2x1x32xf32, #tpu.memory_space<vmem>>, vector<1x1x32xf32>
    %164 = vector.shape_cast %163 : vector<1x1x32xf32> to vector<1x32xf32>
    %c1_85 = arith.constant 1 : index
    %c0_86 = arith.constant 0 : index
    %c0_87 = arith.constant 0 : index
    %165 = vector.load %arg9[%c1_85, %c0_86, %c0_87] : memref<2x32x128xf32, #tpu.memory_space<vmem>>, vector<1x32x128xf32>
    %166 = vector.shape_cast %165 : vector<1x32x128xf32> to vector<32x128xf32>
    %c1_88 = arith.constant 1 : index
    %c0_89 = arith.constant 0 : index
    %c0_90 = arith.constant 0 : index
    %167 = vector.load %arg10[%c1_88, %c0_89, %c0_90] : memref<2x1x128xf32, #tpu.memory_space<vmem>>, vector<1x1x128xf32>
    %168 = vector.shape_cast %167 : vector<1x1x128xf32> to vector<1x128xf32>
    %c1_91 = arith.constant 1 : index
    %c0_92 = arith.constant 0 : index
    %c0_93 = arith.constant 0 : index
    %169 = vector.load %arg11[%c1_91, %c0_92, %c0_93] : memref<2x128x32xf32, #tpu.memory_space<vmem>>, vector<1x128x32xf32>
    %170 = vector.shape_cast %169 : vector<1x128x32xf32> to vector<128x32xf32>
    %c1_94 = arith.constant 1 : index
    %c0_95 = arith.constant 0 : index
    %c0_96 = arith.constant 0 : index
    %171 = vector.load %arg12[%c1_94, %c0_95, %c0_96] : memref<2x1x32xf32, #tpu.memory_space<vmem>>, vector<1x1x32xf32>
    %172 = vector.shape_cast %171 : vector<1x1x32xf32> to vector<1x32xf32>
    %c1_97 = arith.constant 1 : index
    %c0_98 = arith.constant 0 : index
    %c0_99 = arith.constant 0 : index
    %173 = vector.load %arg13[%c1_97, %c0_98, %c0_99] : memref<2x1x32xf32, #tpu.memory_space<vmem>>, vector<1x1x32xf32>
    %174 = vector.shape_cast %173 : vector<1x1x32xf32> to vector<1x32xf32>
    %c1_100 = arith.constant 1 : index
    %c0_101 = arith.constant 0 : index
    %c0_102 = arith.constant 0 : index
    %175 = vector.load %arg14[%c1_100, %c0_101, %c0_102] : memref<2x1x32xf32, #tpu.memory_space<vmem>>, vector<1x1x32xf32>
    %176 = vector.shape_cast %175 : vector<1x1x32xf32> to vector<1x32xf32>
    %c1_103 = arith.constant 1 : index
    %c0_104 = arith.constant 0 : index
    %c0_105 = arith.constant 0 : index
    %177 = vector.load %arg15[%c1_103, %c0_104, %c0_105] : memref<2x1x32xf32, #tpu.memory_space<vmem>>, vector<1x1x32xf32>
    %178 = vector.shape_cast %177 : vector<1x1x32xf32> to vector<1x32xf32>
    %c1_106 = arith.constant 1 : index
    %c0_107 = arith.constant 0 : index
    %c0_108 = arith.constant 0 : index
    %179 = vector.load %arg16[%c1_106, %c0_107, %c0_108] : memref<2x1x32xf32, #tpu.memory_space<vmem>>, vector<1x1x32xf32>
    %180 = vector.shape_cast %179 : vector<1x1x32xf32> to vector<1x32xf32>
    %cst_109 = arith.constant dense<0.000000e+00> : vector<8x96xf32>
    %181 = tpu.matmul %156, %158, %cst_109 {dimension_numbers = #tpu.dot_dimension_numbers<[1], [0], [0], [1], [0, 0, 1, 1], [], []>} : vector<8x32xf32>, vector<32x96xf32>, vector<8x96xf32> -> vector<8x96xf32>
    %182 = vector.broadcast %160 : vector<1x96xf32> to vector<8x96xf32>
    %183 = arith.addf %181, %182 : vector<8x96xf32>
    %184 = vector.extract_strided_slice %183 {offsets = [0, 0], sizes = [8, 32], strides = [1, 1]} : vector<8x96xf32> to vector<8x32xf32>
    %cst_110 = arith.constant 0.353553385 : f32
    %185 = vector.broadcast %cst_110 : f32 to vector<8x32xf32>
    %186 = arith.mulf %184, %185 : vector<8x32xf32>
    %187 = vector.extract_strided_slice %183 {offsets = [0, 32], sizes = [8, 32], strides = [1, 1]} : vector<8x96xf32> to vector<8x32xf32>
    %188 = vector.extract_strided_slice %183 {offsets = [0, 64], sizes = [8, 32], strides = [1, 1]} : vector<8x96xf32> to vector<8x32xf32>
    %189 = tpu.transpose %187, [1, 0] : vector<8x32xf32> -> vector<32x8xf32>
    %190 = vector.extract_strided_slice %186 {offsets = [0, 0], sizes = [8, 8], strides = [1, 1]} : vector<8x32xf32> to vector<8x8xf32>
    %191 = vector.extract_strided_slice %189 {offsets = [0, 0], sizes = [8, 8], strides = [1, 1]} : vector<32x8xf32> to vector<8x8xf32>
    %cst_111 = arith.constant dense<0.000000e+00> : vector<8x8xf32>
    %192 = tpu.matmul %190, %191, %cst_111 {dimension_numbers = #tpu.dot_dimension_numbers<[1], [0], [0], [1], [0, 0, 1, 1], [], []>} : vector<8x8xf32>, vector<8x8xf32>, vector<8x8xf32> -> vector<8x8xf32>
    %cst_112 = arith.constant dense<0xFF800000> : vector<8xf32>
    %193 = vector.multi_reduction <maximumf>, %192, %cst_112 [1] : vector<8x8xf32> to vector<8xf32>
    %194 = vector.shape_cast %193 : vector<8xf32> to vector<8x1xf32>
    %195 = vector.broadcast %194 : vector<8x1xf32> to vector<8x8xf32>
    %196 = arith.subf %192, %195 : vector<8x8xf32>
    %197 = math.exp %196 : vector<8x8xf32>
    %cst_113 = arith.constant dense<0.000000e+00> : vector<8xf32>
    %198 = vector.multi_reduction <add>, %197, %cst_113 [1] : vector<8x8xf32> to vector<8xf32>
    %199 = vector.shape_cast %198 : vector<8xf32> to vector<8x1xf32>
    %200 = vector.broadcast %199 : vector<8x1xf32> to vector<8x8xf32>
    %201 = arith.divf %197, %200 : vector<8x8xf32>
    %202 = vector.extract_strided_slice %188 {offsets = [0, 0], sizes = [8, 8], strides = [1, 1]} : vector<8x32xf32> to vector<8x8xf32>
    %cst_114 = arith.constant dense<0.000000e+00> : vector<8x8xf32>
    %203 = tpu.matmul %201, %202, %cst_114 {dimension_numbers = #tpu.dot_dimension_numbers<[1], [0], [0], [1], [0, 0, 1, 1], [], []>} : vector<8x8xf32>, vector<8x8xf32>, vector<8x8xf32> -> vector<8x8xf32>
    %204 = vector.extract_strided_slice %186 {offsets = [0, 8], sizes = [8, 8], strides = [1, 1]} : vector<8x32xf32> to vector<8x8xf32>
    %205 = vector.extract_strided_slice %189 {offsets = [8, 0], sizes = [8, 8], strides = [1, 1]} : vector<32x8xf32> to vector<8x8xf32>
    %cst_115 = arith.constant dense<0.000000e+00> : vector<8x8xf32>
    %206 = tpu.matmul %204, %205, %cst_115 {dimension_numbers = #tpu.dot_dimension_numbers<[1], [0], [0], [1], [0, 0, 1, 1], [], []>} : vector<8x8xf32>, vector<8x8xf32>, vector<8x8xf32> -> vector<8x8xf32>
    %cst_116 = arith.constant dense<0xFF800000> : vector<8xf32>
    %207 = vector.multi_reduction <maximumf>, %206, %cst_116 [1] : vector<8x8xf32> to vector<8xf32>
    %208 = vector.shape_cast %207 : vector<8xf32> to vector<8x1xf32>
    %209 = vector.broadcast %208 : vector<8x1xf32> to vector<8x8xf32>
    %210 = arith.subf %206, %209 : vector<8x8xf32>
    %211 = math.exp %210 : vector<8x8xf32>
    %cst_117 = arith.constant dense<0.000000e+00> : vector<8xf32>
    %212 = vector.multi_reduction <add>, %211, %cst_117 [1] : vector<8x8xf32> to vector<8xf32>
    %213 = vector.shape_cast %212 : vector<8xf32> to vector<8x1xf32>
    %214 = vector.broadcast %213 : vector<8x1xf32> to vector<8x8xf32>
    %215 = arith.divf %211, %214 : vector<8x8xf32>
    %216 = vector.extract_strided_slice %188 {offsets = [0, 8], sizes = [8, 8], strides = [1, 1]} : vector<8x32xf32> to vector<8x8xf32>
    %cst_118 = arith.constant dense<0.000000e+00> : vector<8x8xf32>
    %217 = tpu.matmul %215, %216, %cst_118 {dimension_numbers = #tpu.dot_dimension_numbers<[1], [0], [0], [1], [0, 0, 1, 1], [], []>} : vector<8x8xf32>, vector<8x8xf32>, vector<8x8xf32> -> vector<8x8xf32>
    %218 = vector.extract_strided_slice %186 {offsets = [0, 16], sizes = [8, 8], strides = [1, 1]} : vector<8x32xf32> to vector<8x8xf32>
    %219 = vector.extract_strided_slice %189 {offsets = [16, 0], sizes = [8, 8], strides = [1, 1]} : vector<32x8xf32> to vector<8x8xf32>
    %cst_119 = arith.constant dense<0.000000e+00> : vector<8x8xf32>
    %220 = tpu.matmul %218, %219, %cst_119 {dimension_numbers = #tpu.dot_dimension_numbers<[1], [0], [0], [1], [0, 0, 1, 1], [], []>} : vector<8x8xf32>, vector<8x8xf32>, vector<8x8xf32> -> vector<8x8xf32>
    %cst_120 = arith.constant dense<0xFF800000> : vector<8xf32>
    %221 = vector.multi_reduction <maximumf>, %220, %cst_120 [1] : vector<8x8xf32> to vector<8xf32>
    %222 = vector.shape_cast %221 : vector<8xf32> to vector<8x1xf32>
    %223 = vector.broadcast %222 : vector<8x1xf32> to vector<8x8xf32>
    %224 = arith.subf %220, %223 : vector<8x8xf32>
    %225 = math.exp %224 : vector<8x8xf32>
    %cst_121 = arith.constant dense<0.000000e+00> : vector<8xf32>
    %226 = vector.multi_reduction <add>, %225, %cst_121 [1] : vector<8x8xf32> to vector<8xf32>
    %227 = vector.shape_cast %226 : vector<8xf32> to vector<8x1xf32>
    %228 = vector.broadcast %227 : vector<8x1xf32> to vector<8x8xf32>
    %229 = arith.divf %225, %228 : vector<8x8xf32>
    %230 = vector.extract_strided_slice %188 {offsets = [0, 16], sizes = [8, 8], strides = [1, 1]} : vector<8x32xf32> to vector<8x8xf32>
    %cst_122 = arith.constant dense<0.000000e+00> : vector<8x8xf32>
    %231 = tpu.matmul %229, %230, %cst_122 {dimension_numbers = #tpu.dot_dimension_numbers<[1], [0], [0], [1], [0, 0, 1, 1], [], []>} : vector<8x8xf32>, vector<8x8xf32>, vector<8x8xf32> -> vector<8x8xf32>
    %232 = vector.extract_strided_slice %186 {offsets = [0, 24], sizes = [8, 8], strides = [1, 1]} : vector<8x32xf32> to vector<8x8xf32>
    %233 = vector.extract_strided_slice %189 {offsets = [24, 0], sizes = [8, 8], strides = [1, 1]} : vector<32x8xf32> to vector<8x8xf32>
    %cst_123 = arith.constant dense<0.000000e+00> : vector<8x8xf32>
    %234 = tpu.matmul %232, %233, %cst_123 {dimension_numbers = #tpu.dot_dimension_numbers<[1], [0], [0], [1], [0, 0, 1, 1], [], []>} : vector<8x8xf32>, vector<8x8xf32>, vector<8x8xf32> -> vector<8x8xf32>
    %cst_124 = arith.constant dense<0xFF800000> : vector<8xf32>
    %235 = vector.multi_reduction <maximumf>, %234, %cst_124 [1] : vector<8x8xf32> to vector<8xf32>
    %236 = vector.shape_cast %235 : vector<8xf32> to vector<8x1xf32>
    %237 = vector.broadcast %236 : vector<8x1xf32> to vector<8x8xf32>
    %238 = arith.subf %234, %237 : vector<8x8xf32>
    %239 = math.exp %238 : vector<8x8xf32>
    %cst_125 = arith.constant dense<0.000000e+00> : vector<8xf32>
    %240 = vector.multi_reduction <add>, %239, %cst_125 [1] : vector<8x8xf32> to vector<8xf32>
    %241 = vector.shape_cast %240 : vector<8xf32> to vector<8x1xf32>
    %242 = vector.broadcast %241 : vector<8x1xf32> to vector<8x8xf32>
    %243 = arith.divf %239, %242 : vector<8x8xf32>
    %244 = vector.extract_strided_slice %188 {offsets = [0, 24], sizes = [8, 8], strides = [1, 1]} : vector<8x32xf32> to vector<8x8xf32>
    %cst_126 = arith.constant dense<0.000000e+00> : vector<8x8xf32>
    %245 = tpu.matmul %243, %244, %cst_126 {dimension_numbers = #tpu.dot_dimension_numbers<[1], [0], [0], [1], [0, 0, 1, 1], [], []>} : vector<8x8xf32>, vector<8x8xf32>, vector<8x8xf32> -> vector<8x8xf32>
    %246 = tpu.concatenate %203, %217, %231, %245 in 1 : vector<8x8xf32>, vector<8x8xf32>, vector<8x8xf32>, vector<8x8xf32> -> vector<8x32xf32>
    %cst_127 = arith.constant dense<0.000000e+00> : vector<8x32xf32>
    %247 = tpu.matmul %246, %162, %cst_127 {dimension_numbers = #tpu.dot_dimension_numbers<[1], [0], [0], [1], [0, 0, 1, 1], [], []>} : vector<8x32xf32>, vector<32x32xf32>, vector<8x32xf32> -> vector<8x32xf32>
    %248 = vector.broadcast %164 : vector<1x32xf32> to vector<8x32xf32>
    %249 = arith.addf %247, %248 : vector<8x32xf32>
    %250 = arith.addf %156, %249 : vector<8x32xf32>
    %cst_128 = arith.constant dense<0.000000e+00> : vector<8xf32>
    %251 = vector.multi_reduction <add>, %250, %cst_128 [1] : vector<8x32xf32> to vector<8xf32>
    %252 = vector.shape_cast %251 : vector<8xf32> to vector<8x1xf32>
    %cst_129 = arith.constant 3.200000e+01 : f32
    %253 = vector.broadcast %cst_129 : f32 to vector<8x1xf32>
    %254 = arith.divf %252, %253 : vector<8x1xf32>
    %255 = vector.broadcast %254 : vector<8x1xf32> to vector<8x32xf32>
    %256 = arith.subf %250, %255 : vector<8x32xf32>
    %257 = arith.mulf %256, %256 : vector<8x32xf32>
    %cst_130 = arith.constant dense<0.000000e+00> : vector<8xf32>
    %258 = vector.multi_reduction <add>, %257, %cst_130 [1] : vector<8x32xf32> to vector<8xf32>
    %259 = vector.shape_cast %258 : vector<8xf32> to vector<8x1xf32>
    %cst_131 = arith.constant 3.200000e+01 : f32
    %260 = vector.broadcast %cst_131 : f32 to vector<8x1xf32>
    %261 = arith.divf %259, %260 : vector<8x1xf32>
    %262 = vector.broadcast %254 : vector<8x1xf32> to vector<8x32xf32>
    %263 = arith.subf %250, %262 : vector<8x32xf32>
    %cst_132 = arith.constant 9.99999974E-6 : f32
    %264 = vector.broadcast %cst_132 : f32 to vector<8x1xf32>
    %265 = arith.addf %261, %264 : vector<8x1xf32>
    %266 = math.rsqrt %265 : vector<8x1xf32>
    %267 = vector.broadcast %266 : vector<8x1xf32> to vector<8x32xf32>
    %268 = arith.mulf %263, %267 : vector<8x32xf32>
    %269 = vector.broadcast %174 : vector<1x32xf32> to vector<8x32xf32>
    %270 = arith.mulf %268, %269 : vector<8x32xf32>
    %271 = vector.broadcast %176 : vector<1x32xf32> to vector<8x32xf32>
    %272 = arith.addf %270, %271 : vector<8x32xf32>
    %cst_133 = arith.constant dense<0.000000e+00> : vector<8x128xf32>
    %273 = tpu.matmul %272, %166, %cst_133 {dimension_numbers = #tpu.dot_dimension_numbers<[1], [0], [0], [1], [0, 0, 1, 1], [], []>} : vector<8x32xf32>, vector<32x128xf32>, vector<8x128xf32> -> vector<8x128xf32>
    %274 = vector.broadcast %168 : vector<1x128xf32> to vector<8x128xf32>
    %275 = arith.addf %273, %274 : vector<8x128xf32>
    %cst_134 = arith.constant 0.000000e+00 : f32
    %276 = vector.broadcast %cst_134 : f32 to vector<8x128xf32>
    %277 = arith.maximumf %275, %276 : vector<8x128xf32>
    %cst_135 = arith.constant dense<0.000000e+00> : vector<8x32xf32>
    %278 = tpu.matmul %277, %170, %cst_135 {dimension_numbers = #tpu.dot_dimension_numbers<[1], [0], [0], [1], [0, 0, 1, 1], [], []>} : vector<8x128xf32>, vector<128x32xf32>, vector<8x32xf32> -> vector<8x32xf32>
    %279 = vector.broadcast %172 : vector<1x32xf32> to vector<8x32xf32>
    %280 = arith.addf %278, %279 : vector<8x32xf32>
    %281 = arith.addf %272, %280 : vector<8x32xf32>
    %cst_136 = arith.constant dense<0.000000e+00> : vector<8xf32>
    %282 = vector.multi_reduction <add>, %281, %cst_136 [1] : vector<8x32xf32> to vector<8xf32>
    %283 = vector.shape_cast %282 : vector<8xf32> to vector<8x1xf32>
    %cst_137 = arith.constant 3.200000e+01 : f32
    %284 = vector.broadcast %cst_137 : f32 to vector<8x1xf32>
    %285 = arith.divf %283, %284 : vector<8x1xf32>
    %286 = vector.broadcast %285 : vector<8x1xf32> to vector<8x32xf32>
    %287 = arith.subf %281, %286 : vector<8x32xf32>
    %288 = arith.mulf %287, %287 : vector<8x32xf32>
    %cst_138 = arith.constant dense<0.000000e+00> : vector<8xf32>
    %289 = vector.multi_reduction <add>, %288, %cst_138 [1] : vector<8x32xf32> to vector<8xf32>
    %290 = vector.shape_cast %289 : vector<8xf32> to vector<8x1xf32>
    %cst_139 = arith.constant 3.200000e+01 : f32
    %291 = vector.broadcast %cst_139 : f32 to vector<8x1xf32>
    %292 = arith.divf %290, %291 : vector<8x1xf32>
    %293 = vector.broadcast %285 : vector<8x1xf32> to vector<8x32xf32>
    %294 = arith.subf %281, %293 : vector<8x32xf32>
    %cst_140 = arith.constant 9.99999974E-6 : f32
    %295 = vector.broadcast %cst_140 : f32 to vector<8x1xf32>
    %296 = arith.addf %292, %295 : vector<8x1xf32>
    %297 = math.rsqrt %296 : vector<8x1xf32>
    %298 = vector.broadcast %297 : vector<8x1xf32> to vector<8x32xf32>
    %299 = arith.mulf %294, %298 : vector<8x32xf32>
    %300 = vector.broadcast %178 : vector<1x32xf32> to vector<8x32xf32>
    %301 = arith.mulf %299, %300 : vector<8x32xf32>
    %302 = vector.broadcast %180 : vector<1x32xf32> to vector<8x32xf32>
    %303 = arith.addf %301, %302 : vector<8x32xf32>
    %304 = tpu.iota {dimensions = array<i32: 0>} : vector<1x8xi32>
    %305 = tpu.iota {dimensions = array<i32: 1>} : vector<1x8xi32>
    %c8_i32 = arith.constant 8 : i32
    %306 = vector.broadcast %c8_i32 : i32 to vector<1x8xi32>
    %307 = arith.muli %304, %306 : vector<1x8xi32>
    %c7_i32 = arith.constant 7 : i32
    %308 = vector.broadcast %c7_i32 : i32 to vector<1x8xi32>
    %309 = arith.addi %307, %308 : vector<1x8xi32>
    %310 = arith.cmpi eq, %305, %309 : vector<1x8xi32>
    %311 = arith.extui %310 : vector<1x8xi1> to vector<1x8xi32>
    %312 = arith.sitofp %311 : vector<1x8xi32> to vector<1x8xf32>
    %cst_141 = arith.constant dense<0.000000e+00> : vector<1x32xf32>
    %313 = tpu.matmul %312, %303, %cst_141 {dimension_numbers = #tpu.dot_dimension_numbers<[1], [0], [0], [1], [0, 0, 1, 1], [], []>} : vector<1x8xf32>, vector<8x32xf32>, vector<1x32xf32> -> vector<1x32xf32>
    %c0_142 = arith.constant 0 : index
    %c0_143 = arith.constant 0 : index
    %314 = vector.load %arg17[%c0_142, %c0_143] : memref<32x1xf32, #tpu.memory_space<vmem>>, vector<32x1xf32>
    %cst_144 = arith.constant dense<0.000000e+00> : vector<1x1xf32>
    %315 = tpu.matmul %313, %314, %cst_144 {dimension_numbers = #tpu.dot_dimension_numbers<[1], [0], [0], [1], [0, 0, 1, 1], [], []>} : vector<1x32xf32>, vector<32x1xf32>, vector<1x1xf32> -> vector<1x1xf32>
    %c0_145 = arith.constant 0 : index
    %c0_146 = arith.constant 0 : index
    %316 = vector.load %arg18[%c0_145, %c0_146] : memref<1x1xf32, #tpu.memory_space<vmem>>, vector<1x1xf32>
    %317 = arith.addf %315, %316 : vector<1x1xf32>
    %c0_147 = arith.constant 0 : index
    %c0_148 = arith.constant 0 : index
    %c0_149 = arith.constant 0 : index
    %318 = vector.load %arg19[%c0_147, %c0_148, %c0_149] : memref<1x1x1xf32, #tpu.memory_space<vmem>>, vector<1x1x1xf32>
    %319 = vector.shape_cast %318 : vector<1x1x1xf32> to vector<1x1xf32>
    %320 = vector.shape_cast %317 : vector<1x1xf32> to vector<1x1x1xf32>
    tpu.vector_store %arg19[%c0_147, %c0_148, %c0_149], %320 {strides = array<i32>} : memref<1x1x1xf32, #tpu.memory_space<vmem>>, vector<1x1x1xf32>,
    return
  }
  func.func @transform_0(%arg0: i32) -> (i32, i32) {
    %c0_i32 = arith.constant 0 : i32
    %c0_i32_0 = arith.constant 0 : i32
    return %arg0, %c0_i32 : i32, i32
  }
  func.func @transform_1(%arg0: i32) -> (i32, i32) {
    %c0_i32 = arith.constant 0 : i32
    %c0_i32_0 = arith.constant 0 : i32
    return %arg0, %c0_i32 : i32, i32
  }
  func.func @transform_2(%arg0: i32) -> (i32, i32) {
    %c0_i32 = arith.constant 0 : i32
    %c0_i32_0 = arith.constant 0 : i32
    %c0_i32_1 = arith.constant 0 : i32
    return %c0_i32, %c0_i32_0 : i32, i32
  }
  func.func @transform_3(%arg0: i32) -> (i32, i32) {
    %c0_i32 = arith.constant 0 : i32
    %c0_i32_0 = arith.constant 0 : i32
    %c0_i32_1 = arith.constant 0 : i32
    return %c0_i32, %c0_i32_0 : i32, i32
  }
  func.func @transform_4(%arg0: i32) -> (i32, i32, i32) {
    %c0_i32 = arith.constant 0 : i32
    %c0_i32_0 = arith.constant 0 : i32
    %c0_i32_1 = arith.constant 0 : i32
    %c0_i32_2 = arith.constant 0 : i32
    return %c0_i32, %c0_i32_0, %c0_i32_1 : i32, i32, i32
  }
  func.func @transform_5(%arg0: i32) -> (i32, i32, i32) {
    %c0_i32 = arith.constant 0 : i32
    %c0_i32_0 = arith.constant 0 : i32
    %c0_i32_1 = arith.constant 0 : i32
    %c0_i32_2 = arith.constant 0 : i32
    return %c0_i32, %c0_i32_0, %c0_i32_1 : i32, i32, i32
  }
  func.func @transform_6(%arg0: i32) -> (i32, i32, i32) {
    %c0_i32 = arith.constant 0 : i32
    %c0_i32_0 = arith.constant 0 : i32
    %c0_i32_1 = arith.constant 0 : i32
    %c0_i32_2 = arith.constant 0 : i32
    return %c0_i32, %c0_i32_0, %c0_i32_1 : i32, i32, i32
  }
  func.func @transform_7(%arg0: i32) -> (i32, i32, i32) {
    %c0_i32 = arith.constant 0 : i32
    %c0_i32_0 = arith.constant 0 : i32
    %c0_i32_1 = arith.constant 0 : i32
    %c0_i32_2 = arith.constant 0 : i32
    return %c0_i32, %c0_i32_0, %c0_i32_1 : i32, i32, i32
  }
  func.func @transform_8(%arg0: i32) -> (i32, i32, i32) {
    %c0_i32 = arith.constant 0 : i32
    %c0_i32_0 = arith.constant 0 : i32
    %c0_i32_1 = arith.constant 0 : i32
    %c0_i32_2 = arith.constant 0 : i32
    return %c0_i32, %c0_i32_0, %c0_i32_1 : i32, i32, i32
  }
  func.func @transform_9(%arg0: i32) -> (i32, i32, i32) {
    %c0_i32 = arith.constant 0 : i32
    %c0_i32_0 = arith.constant 0 : i32
    %c0_i32_1 = arith.constant 0 : i32
    %c0_i32_2 = arith.constant 0 : i32
    return %c0_i32, %c0_i32_0, %c0_i32_1 : i32, i32, i32
  }
  func.func @transform_10(%arg0: i32) -> (i32, i32, i32) {
    %c0_i32 = arith.constant 0 : i32
    %c0_i32_0 = arith.constant 0 : i32
    %c0_i32_1 = arith.constant 0 : i32
    %c0_i32_2 = arith.constant 0 : i32
    return %c0_i32, %c0_i32_0, %c0_i32_1 : i32, i32, i32
  }
  func.func @transform_11(%arg0: i32) -> (i32, i32, i32) {
    %c0_i32 = arith.constant 0 : i32
    %c0_i32_0 = arith.constant 0 : i32
    %c0_i32_1 = arith.constant 0 : i32
    %c0_i32_2 = arith.constant 0 : i32
    return %c0_i32, %c0_i32_0, %c0_i32_1 : i32, i32, i32
  }
  func.func @transform_12(%arg0: i32) -> (i32, i32, i32) {
    %c0_i32 = arith.constant 0 : i32
    %c0_i32_0 = arith.constant 0 : i32
    %c0_i32_1 = arith.constant 0 : i32
    %c0_i32_2 = arith.constant 0 : i32
    return %c0_i32, %c0_i32_0, %c0_i32_1 : i32, i32, i32
  }
  func.func @transform_13(%arg0: i32) -> (i32, i32, i32) {
    %c0_i32 = arith.constant 0 : i32
    %c0_i32_0 = arith.constant 0 : i32
    %c0_i32_1 = arith.constant 0 : i32
    %c0_i32_2 = arith.constant 0 : i32
    return %c0_i32, %c0_i32_0, %c0_i32_1 : i32, i32, i32
  }
  func.func @transform_14(%arg0: i32) -> (i32, i32, i32) {
    %c0_i32 = arith.constant 0 : i32
    %c0_i32_0 = arith.constant 0 : i32
    %c0_i32_1 = arith.constant 0 : i32
    %c0_i32_2 = arith.constant 0 : i32
    return %c0_i32, %c0_i32_0, %c0_i32_1 : i32, i32, i32
  }
  func.func @transform_15(%arg0: i32) -> (i32, i32, i32) {
    %c0_i32 = arith.constant 0 : i32
    %c0_i32_0 = arith.constant 0 : i32
    %c0_i32_1 = arith.constant 0 : i32
    %c0_i32_2 = arith.constant 0 : i32
    return %c0_i32, %c0_i32_0, %c0_i32_1 : i32, i32, i32
  }
  func.func @transform_16(%arg0: i32) -> (i32, i32) {
    %c0_i32 = arith.constant 0 : i32
    %c0_i32_0 = arith.constant 0 : i32
    %c0_i32_1 = arith.constant 0 : i32
    return %c0_i32, %c0_i32_0 : i32, i32
  }
  func.func @transform_17(%arg0: i32) -> (i32, i32) {
    %c0_i32 = arith.constant 0 : i32
    %c0_i32_0 = arith.constant 0 : i32
    %c0_i32_1 = arith.constant 0 : i32
    return %c0_i32, %c0_i32_0 : i32, i32
  }
  func.func @transform_18(%arg0: i32) -> (i32, i32, i32) {
    %c0_i32 = arith.constant 0 : i32
    %c0_i32_0 = arith.constant 0 : i32
    %c0_i32_1 = arith.constant 0 : i32
    return %arg0, %c0_i32, %c0_i32_0 : i32, i32, i32
  }
}

</mosaic_0001>

<bundles_post_ra>
// kernel: transformer_forward.1
= control target key start
LH: loop header
LB: loop body
LE: loop exit
PB: predicated region body
PF: predicated region fallthrough
CT: control target
= control target key end

     0   :  { %s3726_s29 = smov 0   ;;  %s4207_s0 = inlined_call_operand.vmem [shape: f32[16,1], index: 0, kind: input, shape index: {}]   ;;  %s4208_s1 = inlined_call_operand.vmem [shape: f32[16,32], index: 1, kind: input, shape index: {}]   ;;  %s4209_s2 = inlined_call_operand.vmem [shape: f32[1,32], index: 2, kind: input, shape index: {}]   ;;  %s4210_s3 = inlined_call_operand.vmem [shape: f32[1,32], index: 3, kind: input, shape index: {}]   ;;  %s4211_s4 = inlined_call_operand.vmem [shape: f32[2,32,96], index: 4, kind: input, shape index: {}]   ;;  %s4212_s5 = inlined_call_operand.vmem [shape: f32[2,1,96], index: 5, kind: input, shape index: {}]   ;;  %s4213_s6 = inlined_call_operand.vmem [shape: f32[2,32,32], index: 6, kind: input, shape index: {}]   ;;  %s4214_s7 = inlined_call_operand.vmem [shape: f32[2,1,32], index: 7, kind: input, shape index: {}]   ;;  %s4215_s8 = inlined_call_operand.vmem [shape: f32[2,32,128], index: 8, kind: input, shape index: {}]   ;;  %s4216_s9 = inlined_call_operand.vmem [shape: f32[2,1,128], index: 9, kind: input, shape index: {}]   ;;  %s4217_s10 = inlined_call_operand.vmem [shape: f32[2,128,32], index: 10, kind: input, shape index: {}]   ;;  %s4218_s11 = inlined_call_operand.vmem [shape: f32[2,1,32], index: 11, kind: input, shape index: {}]   ;;  %s4219_s12 = inlined_call_operand.vmem [shape: f32[2,1,32], index: 12, kind: input, shape index: {}]   ;;  %s4220_s13 = inlined_call_operand.vmem [shape: f32[2,1,32], index: 13, kind: input, shape index: {}]   ;;  %s4221_s14 = inlined_call_operand.vmem [shape: f32[2,1,32], index: 14, kind: input, shape index: {}]   ;;  %s4222_s15 = inlined_call_operand.vmem [shape: f32[2,1,32], index: 15, kind: input, shape index: {}]   ;;  %s4223_s16 = inlined_call_operand.vmem [shape: f32[32,1], index: 16, kind: input, shape index: {}]   ;;  %s4224_s17 = inlined_call_operand.<no memory space> [shape: f32[1,1], index: 17, kind: input, shape index: {}]   ;;  %s4225_s18 = inlined_call_operand.vmem [shape: f32[2,1,1], index: 18, kind: output, shape index: {}]  }
   0x1   :  { %4235 = sst [smem:[#allocation3_spill]] %s4207_s0  ;;  %v23_v0 = vstv %s4224_s17 }
   0x2   :  { %4236 = sst [smem:[#allocation4_spill]] %s4208_s1  ;;  %24 = vst [vmem:[#allocation2] sm:$0x1] %v23_v0 }
   0x3   :  { %4237 = sst [smem:[#allocation5_spill]] %s4209_s2 }
   0x4 LB: > { %s3014_s30 = sadd.s32 4294967295, %s3608_s29   ;;  %p3018_p0 = scmp.ge.s32.totalorder %s3608_s29, 1  ;;  %s3608_s29 = sphi %s3726_s29, %s30_s29  }
   0x5   : > { %p522_p1 = scmp.lt.s32.totalorder %s3608_s29, 3 }
   0x7   : > { %p523_p2 = pnand %p3018_p0, %p522_p1 }
   0x8   : > { %p577_p3 = scmp.lt.s32.totalorder (!%p523_p2), %s3014_s30, 1  ;;  %v612_v1 = vld [vmem:[%s4211_s4] sm:$0xff] (!%p523_p2)  ;;  %v613_v2 = vld [vmem:[%s4211_s4 + $0x8] sm:$0xff] (!%p523_p2)  ;;  %v3610_v3 = vmov (!%p523_p2), 0   ;;  %v3611_v4 = vmov (!%p523_p2), 0.0|0.0   ;;  %s4238_s2 = sld [smem:[#allocation3_spill]] (!%p523_p2) }
   0x9   : > { %526 = sbr.rel (%p523_p2) target bundleno = 6578 (0x19b2), region = 92  ;;  %3561 = vset.pattern.permute.xlu0 (!%p523_p2), %v3610_v3  ;;  %3445 = vmatprep.subr.bf16.mxu1 (!%p523_p2), %v3611_v4  ;;  %v3446_v5 = vpack.c.bf16 (!%p523_p2), %v613_v2, %v612_v1  ;;  %v614_v7 = vld [vmem:[%s4211_s4 + $0x10] sm:$0xff] (!%p523_p2)  ;;  %v615_v8 = vld [vmem:[%s4211_s4 + $0x18] sm:$0xff] (!%p523_p2)  ;;  %vm3612_vm0 = vmmov (!%p523_p2), 0   ;;  %v3613_v10 = vmov (!%p523_p2), 0.0   ;;  %s4239_s19 = sld [smem:[#allocation5_spill]] (!%p523_p2) }
   0xa   : > { %v3449_v9 = vpack.c.bf16 (!%p523_p2), %v615_v8, %v614_v7  ;;  %3221 = vmatprep.mubr.msk.f32.mxu1 (!%p523_p2), %vm3612_vm0, %v3613_v10  ;;  %3234 = vmatprep.subr.mxu0 (!%p523_p2), %v3613_v10  ;;  %s4240_s21 = sld [smem:[#allocation4_spill]] (!%p523_p2)  ;;  %v3022_v12 = vld [vmem:[%s4210_s3] ss:$0 sm:$0xff] (!%p523_p2)  ;;  %vm654_vm1 = vcmask (!%p523_p2), 261120   ;;  %s3615_s26 = smov (!%p523_p2), 96   ;;  %vm732_vm2 = vcmask (!%p523_p2), 64512  }
   0xb   : > { %3447 = vmatpush3.bf16.msra.mxu1 (!%p523_p2), %v3446_v5  ;;  %3236 = vmatprep.mubr.msk.f32.mxu0 (!%p523_p2), %vm3612_vm0, %v3613_v10  ;;  %v3023_v18 = vld [vmem:[%s4212_s5] ss:$0 sm:$0xff] (!%p523_p2)  ;;  %s3616_s27 = smov (!%p523_p2), 80   ;;  %s3617_s28 = smov (!%p523_p2), 120   ;;  %vm1403_vm3 = vcmask (!%p523_p2), 130048   ;;  %vm1405_vm4 = vcmask (!%p523_p2), 195584  }
   0xc   : > { %3448 = vmatprep.subr.bf16.mxu1 (!%p523_p2), %v3611_v4  ;;  %s4228_s0 = smov (!%p523_p2), 72   ;;  %s4230_s17 = smov (!%p523_p2), 104   ;;  %vm2953_vm6 = vcmask (!%p523_p2), 0  }
   0xd   : > { %s3621_s1 = smov (!%p523_p2), 64   ;;  %s4247_s24 = smov (!%p523_p2), 40  }
   0xf   : > { %3450 = vmatpush3.bf16.msra.mxu1 (!%p523_p2), %v3449_v9  ;;  %v3021_v11 = vld [vmem:[%s4239_s19] ss:$0 sm:$0xff] (!%p523_p2)  ;;  %s4234_s19 = smov (!%p523_p2), 112  }
  0x10   : > { %s4251_s30 = smov (!%p577_p3, %s3014_s30), 1  ;;  %3224 = vmatprep.subr.mxu1 %v3613_v10 }
  0x11   : > { %s3019_s20 = sshll.u32 %s4251_s30, 3 }
  0x12   : > { %s580_s23 = scalar_lea.vmem %s4238_s2, %s3019_s20  ;;  %s584_s22 = scalar_lea.vmem %s4240_s21, %s3019_s20 }
  0x13   : > { %v588_v6 = vld [vmem:[%s580_s23] sm:$0xff]  ;;  %s3614_s20 = smov 88   ;;  %s4227_s21 = smov 48  }
  0x14   : > { %592 = vperm.xlu0 %3561, %v588_v6   ;;  %v610_v15 = vld [vmem:[%s584_s22] sm:$0xff]  ;;  %s4226_s22 = smov 40   ;;  %s4229_s2 = smov 56  }
  0x15   : > { %s4232_s23 = smov 16  }
  0x93   : > { %v593_v13 = vpop.permute.xlu0 %592 }
  0x94   : > { %v601_v14 = vmul.f32 %v3021_v11, %v593_v13 }
  0x96   : > { %v609_v16 = vadd.f32 %v3022_v12, %v601_v14 }
  0x98   : > { %v3769_v17 = vadd.f32 %v610_v15, %v609_v16  ;;  %v617_v16 = vld [vmem:[%s4213_s6] sm:$0xff] }
  0x9a   : > { %3222 = vmatmul.mubr.msk.f32.vlgmr.msra.gmra.mrb[0].mxu1 %vm654_vm1, %v3769_v17 }
  0x9b   : > { %3226 = vmatprep.mubr.msk.f32.mxu1 %vm3612_vm0, %v3613_v10 }
 0x16d   : > { %v724_v19 = vpop.f32.mrb[0].mxu1 }
 0x16e   : > { %v3778_v20 = vadd.f32 %v3023_v18, %v724_v19  ;;  %v3223_v21 = vpop.f32.mrb[1].mxu1  ;;  %v618_v18 = vld [vmem:[%s4213_s6 + $0x8] sm:$0xff] }
 0x16f   : > { %v3452_v19 = vpack.c.bf16 %v618_v18, %v617_v16  ;;  %v620_v21 = vld [vmem:[%s4213_s6 + $0x18] sm:$0xff]  ;;  %v3039_v16 = vld [vmem:[%s4219_s12] ss:$0 sm:$0xff] }
 0x170   : > { %897 = vrot.lane.b32.xlu1 %v3778_v20, %s3614_s20  ;;  %730 = vrot.lane.b32.xlu0 %v3778_v20, %s3615_s26  ;;  %v728_v22 = vmul.f32 0.35355338, %v3778_v20 }
 0x174   : > { %1062 = vrot.lane.b32.xlu0 %v3778_v20, %s3616_s27  ;;  %895 = vrot.lane.b32.xlu1 %v728_v22, %s3617_s28 }
 0x178   : > { %1227 = vrot.lane.b32.xlu0 %v3778_v20, %s4228_s0  ;;  %1060 = vrot.lane.b32.xlu1 %v728_v22, %s4234_s19  ;;  %s4231_s0 = smov 24  }
 0x17c   : > { %1225 = vrot.lane.b32.xlu1 %v728_v22, %s4230_s17 }
 0x1e2   : > { %v898_v23 = vpop.permute.xlu1 %897  ;;  %v731_v24 = vpop.permute.xlu0 %730 }
 0x1e3   : > { %3225 = vmatpush3.xpose.msk.msra.mxu1 %vm732_vm2, %v731_v24  ;;  %3235 = vmatpush3.xpose.msk.msra.mxu0 %vm732_vm2, %v898_v23 }
 0x1e4   : > { %3244 = vmatprep.subr.mxu0 %v3613_v10  ;;  %3229 = vmatprep.subr.mxu1 %v3613_v10 }
 0x1e6   : > { %v1063_v25 = vpop.permute.xlu0 %1062  ;;  %v896_v26 = vpop.permute.xlu1 %895  ;;  %3227 = vmatmul.mubr.msk.f32.vlgmr.msra.gmra.mrb[2].mxu1 %vm732_vm2, %v728_v22 }
 0x1e7   : > { %3237 = vmatmul.mubr.msk.f32.vlgmr.msra.gmra.mrb[0].mxu0 %vm732_vm2, %v896_v26  ;;  %3231 = vmatprep.mubr.msk.f32.mxu1 %vm3612_vm0, %v3613_v10 }
 0x1e8   : > { %3245 = vmatpush3.xpose.msk.msra.mxu0 %vm732_vm2, %v1063_v25  ;;  %3246 = vmatprep.mubr.msk.f32.mxu0 %vm3612_vm0, %v3613_v10 }
 0x1e9   : > { %3254 = vmatprep.subr.mxu0 %v3613_v10 }
 0x1ea   : > { %v1228_v27 = vpop.permute.xlu0 %1227  ;;  %v1061_v28 = vpop.permute.xlu1 %1060 }
 0x1eb   : > { %3247 = vmatmul.mubr.msk.f32.vlgmr.msra.gmra.mrb[2].mxu0 %vm732_vm2, %v1061_v28 }
 0x1ec   : > { %3255 = vmatpush3.xpose.msk.msra.mxu0 %vm732_vm2, %v1228_v27  ;;  %3256 = vmatprep.mubr.msk.f32.mxu0 %vm3612_vm0, %v3613_v10 }
 0x1ed   : > { %3451 = vmatprep.subr.bf16.mxu0 %v3611_v4 }
 0x1ee   : > { %v1226_v29 = vpop.permute.xlu1 %1225 }
 0x1ef   : > { %3257 = vmatmul.mubr.msk.f32.vlgmr.msra.gmra.mrb[4].mxu0 %vm732_vm2, %v1226_v29 }
 0x1f0   : > { %3272 = vmatprep.mubr.msk.f32.mxu0 %vm3612_vm0, %v3613_v10  ;;  %3453 = vmatpush3.bf16.msra.mxu0 %v3452_v19  ;;  %v3040_v19 = vld [vmem:[%s4220_s13] ss:$0 sm:$0xff] }
 0x1f1   : > { %3454 = vmatprep.subr.bf16.mxu0 %v3611_v4 }
 0x2b9   : > { %v804_v30 = vpop.f32.mrb[2].mxu1 }
 0x2ba   : > { %v3228_v31 = vpop.f32.mrb[3].mxu1  ;;  %v969_v32 = vpop.f32.mrb[0].mxu0  ;;  %v808_v33 = vsel %vm732_vm2, %v804_v30, -inf }
 0x2bb   : > { %v3238_v34 = vpop.f32.mrb[1].mxu0  ;;  %809 = vmax.xlane.f32.xlu0 %v808_v33  ;;  %v973_v35 = vsel %vm732_vm2, %v969_v32, -inf }
 0x2bc   : > { %974 = vmax.xlane.f32.xlu1 %v973_v35 }
 0x2be   : > { %v1134_v36 = vpop.f32.mrb[2].mxu0 }
 0x2bf   : > { %v3248_v37 = vpop.f32.mrb[3].mxu0  ;;  %v1138_v38 = vsel %vm732_vm2, %v1134_v36, -inf }
 0x2c0   : > { %1139 = vmax.xlane.f32.xlu0 %v1138_v38  ;;  %v3037_v37 = vld [vmem:[%s4214_s7] ss:$0 sm:$0xff] }
 0x2c2   : > { %v1299_v39 = vpop.f32.mrb[4].mxu0 }
 0x2c3   : > { %v3258_v40 = vpop.f32.mrb[5].mxu0  ;;  %v1303_v41 = vsel %vm732_vm2, %v1299_v39, -inf }
 0x2c4   : > { %1304 = vmax.xlane.f32.xlu0 %v1303_v41 }
 0x2cd   : > { %819 = vrot.lane.b32.xlu1 %v3778_v20, %s3621_s1 }
 0x348   : > { %v810_v42 = vpop.xlane.xlu0 %809 }
 0x349   : > { %v811_v43 = vsub.f32 %v804_v30, %v810_v42  ;;  %v975_v44 = vpop.xlane.xlu1 %974 }
 0x34a   : > { %v976_v45 = vsub.f32 %v969_v32, %v975_v44 }
 0x34b   : > { %v812_v46 = vmul.f32 1.442695, %v811_v43 }
 0x34c   : > { %v977_v47 = vmul.f32 1.442695, %v976_v45 }
 0x34d   : > { %3562 = vpow2.f32 %v812_v46  ;;  %v820_v48 = vpop.permute.xlu1 %819  ;;  %v1140_v49 = vpop.xlane.xlu0 %1139 }
 0x34e   : > { %3564 = vpow2.f32 %v977_v47  ;;  %v1141_v50 = vsub.f32 %v1134_v36, %v1140_v49  ;;  %3230 = vmatpush3.msra.mxu1 %v820_v48  ;;  %v622_v48 = vld [vmem:[%s4215_s8] sm:$0xff]  ;;  %v623_v49 = vld [vmem:[%s4215_s8 + $0x8] sm:$0xff] }
 0x34f   : > { %3239 = vmatprep.subr.mxu1 %v3613_v10 }
 0x350   : > { %v1142_v51 = vmul.f32 1.442695, %v1141_v50  ;;  %v3458_v50 = vpack.c.bf16 %v623_v49, %v622_v48 }
 0x351   : > { %v1305_v52 = vpop.xlane.xlu0 %1304 }
 0x352   : > { %3566 = vpow2.f32 %v1142_v51  ;;  %v1306_v53 = vsub.f32 %v1299_v39, %v1305_v52  ;;  %v625_v51 = vld [vmem:[%s4215_s8 + $0x18] sm:$0xff] }
 0x354   : > { %v1307_v54 = vmul.f32 1.442695, %v1306_v53  ;;  %v627_v53 = vld [vmem:[%s4217_s10] sm:$0xff] }
 0x356   : > { %3568 = vpow2.f32 %v1307_v54  ;;  %v628_v54 = vld [vmem:[%s4217_s10 + $0x8] sm:$0xff] }
 0x357   : > { %v3563_v55 = vpop.eup %3562 }
 0x358   : > { %v3565_v56 = vpop.eup %3564  ;;  %v814_v57 = vsel %vm732_vm2, %v3563_v55, 0.0 }
 0x359   : > { %815 = vadd.xlane.f32.xlu1 %v814_v57  ;;  %v979_v58 = vsel %vm732_vm2, %v3565_v56, 0.0  ;;  %v630_v57 = vld [vmem:[%s4217_s10 + $0x18] sm:$0xff] }
 0x35a   : > { %980 = vadd.xlane.f32.xlu0 %v979_v58 }
 0x35c   : > { %v3567_v59 = vpop.eup %3566 }
 0x35d   : > { %v1144_v60 = vsel %vm732_vm2, %v3567_v59, 0.0 }
 0x35e   : > { %1145 = vadd.xlane.f32.xlu1 %v1144_v60  ;;  %v632_v60 = vld [vmem:[%s4217_s10 + $0x28] sm:$0xff] }
 0x360   : > { %v3569_v61 = vpop.eup %3568 }
 0x361   : > { %v1309_v62 = vsel %vm732_vm2, %v3569_v61, 0.0 }
 0x362   : > { %1310 = vadd.xlane.f32.xlu0 %v1309_v62  ;;  %v633_v62 = vld [vmem:[%s4217_s10 + $0x30] sm:$0xff] }
 0x36f   : > { %1149 = vrot.lane.b32.xlu1 %v3778_v20, %s4227_s21 }
 0x373   : > { %1314 = vrot.lane.b32.xlu1 %v3778_v20, %s4226_s22  ;;  %s4233_s22 = smov 8  }
 0x378   : > { %984 = vrot.lane.b32.xlu0 %v3778_v20, %s4229_s2  ;;  %v619_v20 = vld [vmem:[%s4213_s6 + $0x10] sm:$0xff]  ;;  %s4246_s2 = smov 8  }
 0x379   : > { %v3455_v22 = vpack.c.bf16 %v620_v21, %v619_v20 }
 0x37b   : > { %3456 = vmatpush3.bf16.msra.mxu0 %v3455_v22  ;;  %v641_v22 = vld [vmem:[%s4217_s10 + $0x70] sm:$0xff] }
 0x37c   : > { %3463 = vmatprep.subr.bf16.mxu0 %v3611_v4 }
 0x3e6   : > { %v816_v63 = vpop.xlane.xlu1 %815 }
 0x3e7   : > { %3570 = vrcp.f32 %v816_v63  ;;  %v981_v0 = vpop.xlane.xlu0 %980  ;;  %v634_v63 = vld [vmem:[%s4217_s10 + $0x38] sm:$0xff] }
 0x3e8   : > { %3572 = vrcp.f32 %v981_v0  ;;  %v3473_v0 = vpack.c.bf16 %v634_v63, %v633_v62 }
 0x3eb   : > { %v1146_v1 = vpop.xlane.xlu1 %1145 }
 0x3ec   : > { %3574 = vrcp.f32 %v1146_v1  ;;  %v635_v1 = vld [vmem:[%s4217_s10 + $0x40] sm:$0xff] }
 0x3ef   : > { %v1311_v2 = vpop.xlane.xlu0 %1310  ;;  %v1150_v9 = vpop.permute.xlu1 %1149 }
 0x3f0   : > { %3576 = vrcp.f32 %v1311_v2  ;;  %v636_v2 = vld [vmem:[%s4217_s10 + $0x48] sm:$0xff] }
 0x3f1   : > { %v3571_v3 = vpop.eup %3570 }
 0x3f2   : > { %v818_v5 = vmul.f32 %v3571_v3, %v3563_v55  ;;  %v3573_v6 = vpop.eup %3572  ;;  %v629_v55 = vld [vmem:[%s4217_s10 + $0x10] sm:$0xff]  ;;  %v3476_v3 = vpack.c.bf16 %v636_v2, %v635_v1 }
 0x3f3   : > { %v985_v7 = vpop.permute.xlu0 %984  ;;  %v983_v8 = vmul.f32 %v3573_v6, %v3565_v56  ;;  %v1315_v14 = vpop.permute.xlu1 %1314  ;;  %v3464_v56 = vpack.c.bf16 %v628_v54, %v627_v53  ;;  %v3467_v58 = vpack.c.bf16 %v630_v57, %v629_v55  ;;  %v638_v6 = vld [vmem:[%s4217_s10 + $0x58] sm:$0xff]  ;;  %v3082_v55 = vld [vmem:[%s4212_s5 + $0x1] ss:$0 sm:$0xff] }
 0x3f4   : > { %3232 = vmatmul.mubr.msk.f32.vlgmr.msra.gmra.mrb[4].mxu1 %vm732_vm2, %v818_v5  ;;  %v637_v5 = vld [vmem:[%s4217_s10 + $0x50] sm:$0xff] }
 0x3f5   : > { %3240 = vmatpush3.msra.mxu1 %v985_v7  ;;  %3241 = vmatprep.mubr.msk.f32.mxu1 %vm3612_vm0, %v3613_v10  ;;  %v3479_v7 = vpack.c.bf16 %v638_v6, %v637_v5 }
 0x3f6   : > { %3249 = vmatprep.subr.mxu1 %v3613_v10  ;;  %v3575_v11 = vpop.eup %3574 }
 0x3f7   : > { %v1148_v12 = vmul.f32 %v3575_v11, %v3567_v59  ;;  %v631_v59 = vld [vmem:[%s4217_s10 + $0x20] sm:$0xff] }
 0x3f8   : > { %3242 = vmatmul.mubr.msk.f32.vlgmr.msra.gmra.mrb[6].mxu1 %vm732_vm2, %v983_v8  ;;  %v639_v8 = vld [vmem:[%s4217_s10 + $0x60] sm:$0xff] }
 0x3f9   : > { %3250 = vmatpush3.msra.mxu1 %v1150_v9  ;;  %3251 = vmatprep.mubr.msk.f32.mxu1 %vm3612_vm0, %v3613_v10  ;;  %v640_v9 = vld [vmem:[%s4217_s10 + $0x68] sm:$0xff] }
 0x3fa   : > { %3259 = vmatprep.subr.mxu1 %v3613_v10  ;;  %v3577_v13 = vpop.eup %3576  ;;  %v3482_v11 = vpack.c.bf16 %v640_v9, %v639_v8 }
 0x3fb   : > { %v1313_v15 = vmul.f32 %v3577_v13, %v3569_v61  ;;  %v3470_v61 = vpack.c.bf16 %v632_v60, %v631_v59 }
 0x3fc   : > { %3252 = vmatmul.mubr.msk.f32.vlgmr.msra.gmra.mrb[8].mxu1 %vm732_vm2, %v1148_v12 }
 0x3fd   : > { %3260 = vmatpush3.msra.mxu1 %v1315_v14  ;;  %3261 = vmatprep.mubr.msk.f32.mxu1 %vm3612_vm0, %v3613_v10 }
 0x3fe   : > { %3457 = vmatprep.subr.bf16.mxu1 %v3611_v4 }
 0x400   : > { %3262 = vmatmul.mubr.msk.f32.vlgmr.msra.gmra.mrb[10].mxu1 %vm732_vm2, %v1313_v15 }
 0x401   : > { %3283 = vmatprep.mubr.msk.f32.mxu1 %vm3612_vm0, %v3613_v10  ;;  %3459 = vmatpush3.bf16.msra.mxu1 %v3458_v50 }
 0x402   : > { %3460 = vmatprep.subr.bf16.mxu1 %v3611_v4 }
 0x4c7   : > { %v891_v23 = vpop.f32.mrb[4].mxu1 }
 0x4c8   : > { %v3233_v24 = vpop.f32.mrb[5].mxu1 }
 0x4cb   : > { %v1056_v25 = vpop.f32.mrb[6].mxu1 }
 0x4cc   : > { %1391 = vrot.lane.b32.xlu0 %v1056_v25, %s4233_s22  ;;  %v3243_v26 = vpop.f32.mrb[7].mxu1  ;;  %v3041_v25 = vld [vmem:[%s4216_s9] ss:$0 sm:$0xff]  ;;  %s587_s22 = scalar_lea.vmem %s4225_s18, %s4251_s30 }
 0x4cf   : > { %v1221_v27 = vpop.f32.mrb[8].mxu1 }
 0x4d0   : > { %1395 = vrot.lane.b32.xlu1 %v1221_v27, %s4232_s23  ;;  %v3253_v28 = vpop.f32.mrb[9].mxu1 }
 0x4d3   : > { %v1386_v29 = vpop.f32.mrb[10].mxu1 }
 0x4d4   : > { %1399 = vrot.lane.b32.xlu0 %v1386_v29, %s4231_s0  ;;  %v3263_v30 = vpop.f32.mrb[11].mxu1 }
 0x4d5   : > { %v3043_v30 = vld [vmem:[%s4218_s11] ss:$0 sm:$0xff] }
 0x53e   : > { %v1392_v31 = vpop.permute.xlu0 %1391 }
 0x53f   : > { %v1402_v33 = vsel %vm732_vm2, %v891_v23, %v1392_v31  ;;  %v642_v23 = vld [vmem:[%s4217_s10 + $0x78] sm:$0xff] }
 0x540   : > { %v3485_v24 = vpack.c.bf16 %v642_v23, %v641_v22 }
 0x542   : > { %v1396_v32 = vpop.permute.xlu1 %1395 }
 0x543   : > { %v1404_v34 = vsel %vm1403_vm3, %v1402_v33, %v1396_v32 }
 0x546   : > { %v1400_v35 = vpop.permute.xlu0 %1399 }
 0x547   : > { %v1406_v36 = vsel %vm1405_vm4, %v1404_v34, %v1400_v35 }
 0x548   : > { %3273 = vmatmul.mubr.msk.f32.vlgmr.msra.gmra.mrb[6].mxu0 %vm654_vm1, %v1406_v36 }
 0x549   : > { %3318 = vmatprep.mubr.msk.f32.mxu0 %vm3612_vm0, %v3613_v10  ;;  %3465 = vmatpush3.bf16.msra.mxu0 %v3464_v56 }
 0x54a   : > { %3466 = vmatprep.subr.bf16.mxu0 %v3611_v4 }
 0x54d   : > { %3468 = vmatpush3.bf16.msra.mxu0 %v3467_v58 }
 0x54e   : > { %3469 = vmatprep.subr.bf16.mxu0 %v3611_v4 }
 0x551   : > { %3471 = vmatpush3.bf16.msra.mxu0 %v3470_v61 }
 0x552   : > { %3472 = vmatprep.subr.bf16.mxu0 %v3611_v4 }
 0x555   : > { %3474 = vmatpush3.bf16.msra.mxu0 %v3473_v0 }
 0x556   : > { %3475 = vmatprep.subr.bf16.mxu0 %v3611_v4 }
 0x559   : > { %3477 = vmatpush3.bf16.msra.mxu0 %v3476_v3 }
 0x55a   : > { %3478 = vmatprep.subr.bf16.mxu0 %v3611_v4 }
 0x55d   : > { %3480 = vmatpush3.bf16.msra.mxu0 %v3479_v7 }
 0x55e   : > { %3481 = vmatprep.subr.bf16.mxu0 %v3611_v4 }
 0x561   : > { %3483 = vmatpush3.bf16.msra.mxu0 %v3482_v11 }
 0x562   : > { %3484 = vmatprep.subr.bf16.mxu0 %v3611_v4 }
 0x565   : > { %3486 = vmatpush3.bf16.msra.mxu0 %v3485_v24 }
 0x566   : > { %3362 = vmatprep.subr.mxu0 %v3613_v10 }
 0x61b   : > { %v1482_v38 = vpop.f32.mrb[6].mxu0 }
 0x61c   : > { %v1483_v39 = vadd.f32 %v3037_v37, %v1482_v38  ;;  %v3274_v40 = vpop.f32.mrb[7].mxu0 }
 0x61e   : > { %v1486_v41 = vadd.f32 %v1483_v39, %v3769_v17  ;;  %v624_v17 = vld [vmem:[%s4215_s8 + $0x10] sm:$0xff] }
 0x61f   : > { %v3461_v52 = vpack.c.bf16 %v625_v51, %v624_v17  ;;  %v3044_v17 = vld [vmem:[%s4221_s14] ss:$0 sm:$0xff] }
 0x620   : > { %v1487_v42 = vsel %vm654_vm1, %v1486_v41, 0.0 }
 0x621   : > { %1488 = vadd.xlane.f32.xlu1 %v1487_v42  ;;  %3462 = vmatpush3.bf16.msra.mxu1 %v3461_v52  ;;  %v3047_v42 = vld [vmem:[%s4211_s4 + $0x28] sm:$0xff]  ;;  %v3045_v52 = vld [vmem:[%s4222_s15] ss:$0 sm:$0xff] }
 0x622   : > { %3487 = vmatprep.subr.bf16.mxu1 %v3611_v4 }
 0x6ae   : > { %v1489_v43 = vpop.xlane.xlu1 %1488 }
 0x6af   : > { %v1491_v44 = vmul.f32 0.03125, %v1489_v43 }
 0x6b1   : > { %v1492_v45 = vsub.f32 %v1486_v41, %v1491_v44  ;;  %v3046_v41 = vld [vmem:[%s4211_s4 + $0x20] sm:$0xff]  ;;  %v3048_v44 = vld [vmem:[%s4211_s4 + $0x30] sm:$0xff] }
 0x6b2   : > { %v3488_v43 = vpack.c.bf16 %v3047_v42, %v3046_v41 }
 0x6b3   : > { %v1493_v46 = vmul.f32 %v1492_v45, %v1492_v45 }
 0x6b5   : > { %v1494_v47 = vsel %vm654_vm1, %v1493_v46, 0.0 }
 0x6b6   : > { %1495 = vadd.xlane.f32.xlu0 %v1494_v47 }
 0x743   : > { %v1496_v12 = vpop.xlane.xlu0 %1495 }
 0x744   : > { %v1497_v13 = vmul.f32 0.03125, %v1496_v12 }
 0x746   : > { %v1498_v14 = vadd.f32 1e-05, %v1497_v13 }
 0x748   : > { %3578 = vrsqrt.f32 %v1498_v14 }
 0x752   : > { %v3579_v15 = vpop.eup %3578 }
 0x753   : > { %v1500_v18 = vmul.f32 %v3579_v15, %v1492_v45  ;;  %v3049_v45 = vld [vmem:[%s4211_s4 + $0x38] sm:$0xff] }
 0x754   : > { %v3491_v46 = vpack.c.bf16 %v3049_v45, %v3048_v44 }
 0x755   : > { %v1507_v20 = vmul.f32 %v3039_v16, %v1500_v18 }
 0x757   : > { %v1514_v21 = vadd.f32 %v3040_v19, %v1507_v20 }
 0x759   : > { %3284 = vmatmul.mubr.msk.f32.vlgmr.msra.gmra.mrb[12].mxu1 %vm654_vm1, %v1514_v21 }
 0x75a   : > { %3329 = vmatprep.mubr.msk.f32.mxu1 %vm3612_vm0, %v3613_v10  ;;  %3489 = vmatpush3.bf16.msra.mxu1 %v3488_v43 }
 0x75b   : > { %3490 = vmatprep.subr.bf16.mxu1 %v3611_v4 }
 0x75e   : > { %3492 = vmatpush3.bf16.msra.mxu1 %v3491_v46 }
 0x75f   : > { %3332 = vmatprep.subr.mxu1 %v3613_v10 }
 0x82c   : > { %v1590_v26 = vpop.f32.mrb[12].mxu1 }
 0x82d   : > { %v1591_v27 = vadd.f32 %v3041_v25, %v1590_v26  ;;  %v3285_v28 = vpop.f32.mrb[13].mxu1 }
 0x82f   : > { %v1594_v29 = vmax.f32 %v1591_v27, 0.0 }
 0x831   : > { %3319 = vmatmul.mubr.f32.vlgmr.msra.gmra.mrb[8].mxu0 %v1594_v29 }
 0x832   : > { %3364 = vmatprep.mubr.msk.f32.mxu0 %vm3612_vm0, %v3613_v10 }
 0x904   : > { %v1667_v31 = vpop.f32.mrb[8].mxu0 }
 0x905   : > { %v1668_v32 = vadd.f32 %v3043_v30, %v1667_v31  ;;  %v3320_v33 = vpop.f32.mrb[9].mxu0 }
 0x907   : > { %v1671_v34 = vadd.f32 %v1668_v32, %v1514_v21 }
 0x909   : > { %v1672_v35 = vsel %vm654_vm1, %v1671_v34, 0.0 }
 0x90a   : > { %1673 = vadd.xlane.f32.xlu0 %v1672_v35 }
 0x997   : > { %v1674_v36 = vpop.xlane.xlu0 %1673 }
 0x998   : > { %v1675_v37 = vmul.f32 0.03125, %v1674_v36 }
 0x99a   : > { %v1676_v38 = vsub.f32 %v1671_v34, %v1675_v37 }
 0x99c   : > { %v1677_v39 = vmul.f32 %v1676_v38, %v1676_v38 }
 0x99e   : > { %v1678_v40 = vsel %vm654_vm1, %v1677_v39, 0.0 }
 0x99f   : > { %1679 = vadd.xlane.f32.xlu1 %v1678_v40 }
 0xa2c   : > { %v1680_v47 = vpop.xlane.xlu1 %1679 }
 0xa2d   : > { %v1681_v48 = vmul.f32 0.03125, %v1680_v47 }
 0xa2f   : > { %v1682_v49 = vadd.f32 1e-05, %v1681_v48 }
 0xa31   : > { %3580 = vrsqrt.f32 %v1682_v49 }
 0xa3b   : > { %v3581_v50 = vpop.eup %3580 }
 0xa3c   : > { %v1684_v51 = vmul.f32 %v3581_v50, %v1676_v38 }
 0xa3e   : > { %v1691_v53 = vmul.f32 %v3044_v17, %v1684_v51 }
 0xa40   : > { %v3982_v54 = vadd.f32 %v3045_v52, %v1691_v53 }
 0xa42   : > { %3330 = vmatmul.mubr.msk.f32.vlgmr.msra.gmra.mrb[14].mxu1 %vm654_vm1, %v3982_v54 }
 0xa43   : > { %3334 = vmatprep.mubr.msk.f32.mxu1 %vm3612_vm0, %v3613_v10 }
 0xb15   : > { %v1822_v56 = vpop.f32.mrb[14].mxu1 }
 0xb16   : > { %v3991_v57 = vadd.f32 %v3082_v55, %v1822_v56  ;;  %v3331_v58 = vpop.f32.mrb[15].mxu1 }
 0xb18   : > { %1828 = vrot.lane.b32.xlu0 %v3991_v57, %s3615_s26  ;;  %v1826_v59 = vmul.f32 0.35355338, %v3991_v57  ;;  %s4242_s26 = smov 104  }
 0xb1c   : > { %1994 = vrot.lane.b32.xlu0 %v3991_v57, %s3614_s20  ;;  %s4241_s20 = smov 112  }
 0xb20   : > { %1992 = vrot.lane.b32.xlu0 %v1826_v59, %s3617_s28  ;;  %s4243_s28 = smov 56  }
 0xb8a   : > { %v1829_v60 = vpop.permute.xlu0 %1828 }
 0xb8b   : > { %3333 = vmatpush3.xpose.msk.msra.mxu1 %vm732_vm2, %v1829_v60 }
 0xb8c   : > { %3337 = vmatprep.subr.mxu1 %v3613_v10 }
 0xb8e   : > { %3335 = vmatmul.mubr.msk.f32.vlgmr.msra.gmra.mrb[16].mxu1 %vm732_vm2, %v1826_v59  ;;  %v1995_v9 = vpop.permute.xlu0 %1994 }
 0xb8f   : > { %3339 = vmatprep.mubr.msk.f32.mxu1 %vm3612_vm0, %v3613_v10 }
 0xb92   : > { %v1993_v12 = vpop.permute.xlu0 %1992 }
 0xc61   : > { %v1901_v61 = vpop.f32.mrb[16].mxu1 }
 0xc62   : > { %v3336_v62 = vpop.f32.mrb[17].mxu1  ;;  %v1905_v63 = vsel %vm732_vm2, %v1901_v61, -inf }
 0xc63   : > { %1906 = vmax.xlane.f32.xlu1 %v1905_v63  ;;  %v3054_v62 = vld [vmem:[%s4213_s6 + $0x38] sm:$0xff] }
 0xcf0   : > { %v1907_v0 = vpop.xlane.xlu1 %1906 }
 0xcf1   : > { %v1908_v1 = vsub.f32 %v1901_v61, %v1907_v0  ;;  %v3053_v61 = vld [vmem:[%s4213_s6 + $0x30] sm:$0xff] }
 0xcf2   : > { %v3497_v63 = vpack.c.bf16 %v3054_v62, %v3053_v61  ;;  %v3100_v62 = vld [vmem:[%s4216_s9 + $0x1] ss:$0 sm:$0xff] }
 0xcf3   : > { %v1909_v2 = vmul.f32 1.442695, %v1908_v1 }
 0xcf5   : > { %3582 = vpow2.f32 %v1909_v2 }
 0xcff   : > { %v3583_v3 = vpop.eup %3582 }
 0xd00   : > { %v1911_v5 = vsel %vm732_vm2, %v3583_v3, 0.0 }
 0xd01   : > { %1912 = vadd.xlane.f32.xlu1 %v1911_v5 }
 0xd12   : > { %1916 = vrot.lane.b32.xlu1 %v3991_v57, %s3621_s1  ;;  %s4244_s1 = smov 72  }
 0xd8e   : > { %v1913_v6 = vpop.xlane.xlu1 %1912 }
 0xd8f   : > { %3584 = vrcp.f32 %v1913_v6 }
 0xd92   : > { %v1917_v7 = vpop.permute.xlu1 %1916 }
 0xd93   : > { %3338 = vmatpush3.msra.mxu1 %v1917_v7 }
 0xd94   : > { %3342 = vmatprep.subr.mxu1 %v3613_v10 }
 0xd99   : > { %v3585_v8 = vpop.eup %3584 }
 0xd9a   : > { %v1915_v11 = vmul.f32 %v3585_v8, %v3583_v3 }
 0xd9c   : > { %3340 = vmatmul.mubr.msk.f32.vlgmr.msra.gmra.mrb[18].mxu1 %vm732_vm2, %v1915_v11 }
 0xd9d   : > { %3343 = vmatpush3.xpose.msk.msra.mxu1 %vm732_vm2, %v1995_v9  ;;  %3344 = vmatprep.mubr.msk.f32.mxu1 %vm3612_vm0, %v3613_v10 }
 0xd9e   : > { %3347 = vmatprep.subr.mxu1 %v3613_v10 }
 0xda0   : > { %3345 = vmatmul.mubr.msk.f32.vlgmr.msra.gmra.mrb[20].mxu1 %vm732_vm2, %v1993_v12  ;;  %v3096_v12 = vld [vmem:[%s4214_s7 + $0x1] ss:$0 sm:$0xff] }
 0xda1   : > { %3349 = vmatprep.mubr.msk.f32.mxu1 %vm3612_vm0, %v3613_v10 }
 0xe6f   : > { %v4017_v13 = vpop.f32.mrb[18].mxu1 }
 0xe70   : > { %v3341_v14 = vpop.f32.mrb[19].mxu1 }
 0xe73   : > { %v2066_v15 = vpop.f32.mrb[20].mxu1 }
 0xe74   : > { %v3346_v16 = vpop.f32.mrb[21].mxu1  ;;  %v2070_v18 = vsel %vm732_vm2, %v2066_v15, -inf }
 0xe75   : > { %2071 = vmax.xlane.f32.xlu1 %v2070_v18 }
 0xe86   : > { %2159 = vrot.lane.b32.xlu1 %v3991_v57, %s3616_s27  ;;  %s4245_s27 = smov 48  }
 0xe8a   : > { %2157 = vrot.lane.b32.xlu1 %v1826_v59, %s4241_s20 }
 0xe8e   : > { %2322 = vrot.lane.b32.xlu1 %v1826_v59, %s4242_s26  ;;  %v3052_v59 = vld [vmem:[%s4213_s6 + $0x28] sm:$0xff]  ;;  %s4248_s26 = smov 16  }
 0xf02   : > { %v2072_v19 = vpop.xlane.xlu1 %2071 }
 0xf03   : > { %v2073_v20 = vsub.f32 %v2066_v15, %v2072_v19 }
 0xf05   : > { %v2074_v21 = vmul.f32 1.442695, %v2073_v20 }
 0xf06   : > { %v2160_v24 = vpop.permute.xlu1 %2159 }
 0xf07   : > { %3586 = vpow2.f32 %v2074_v21 }
 0xf0a   : > { %v2158_v27 = vpop.permute.xlu1 %2157 }
 0xf0e   : > { %v2323_v30 = vpop.permute.xlu1 %2322 }
 0xf11   : > { %v3587_v22 = vpop.eup %3586 }
 0xf12   : > { %v2076_v23 = vsel %vm732_vm2, %v3587_v22, 0.0 }
 0xf13   : > { %2077 = vadd.xlane.f32.xlu0 %v2076_v23 }
 0xf29   : > { %2081 = vrot.lane.b32.xlu0 %v3991_v57, %s4243_s28  ;;  %s4249_s28 = smov 24  }
 0xf2d   : > { %2324 = vrot.lane.b32.xlu0 %v3991_v57, %s4244_s1 }
 0xfa0   : > { %v2078_v25 = vpop.xlane.xlu0 %2077 }
 0xfa1   : > { %3588 = vrcp.f32 %v2078_v25  ;;  %v3057_v25 = vld [vmem:[%s4215_s8 + $0x28] sm:$0xff] }
 0xfa4   : > { %v2082_v26 = vpop.permute.xlu0 %2081 }
 0xfa5   : > { %3348 = vmatpush3.msra.mxu1 %v2082_v26 }
 0xfa6   : > { %3352 = vmatprep.subr.mxu1 %v3613_v10 }
 0xfa8   : > { %v2325_v28 = vpop.permute.xlu0 %2324 }
 0xfa9   : > { %3363 = vmatpush3.xpose.msk.msra.mxu0 %vm732_vm2, %v2325_v28 }
 0xfaa   : > { %3493 = vmatprep.subr.bf16.mxu0 %v3611_v4 }
 0xfab   : > { %v3589_v29 = vpop.eup %3588 }
 0xfac   : > { %v2080_v31 = vmul.f32 %v3589_v29, %v3587_v22  ;;  %3365 = vmatmul.mubr.msk.f32.vlgmr.msra.gmra.mrb[10].mxu0 %vm732_vm2, %v2323_v30  ;;  %v3061_v29 = vld [vmem:[%s4217_s10 + $0x80] sm:$0xff]  ;;  %v3062_v30 = vld [vmem:[%s4217_s10 + $0x88] sm:$0xff] }
 0xfad   : > { %3380 = vmatprep.mubr.msk.f32.mxu0 %vm3612_vm0, %v3613_v10 }
 0xfae   : > { %3350 = vmatmul.mubr.msk.f32.vlgmr.msra.gmra.mrb[22].mxu1 %vm732_vm2, %v2080_v31  ;;  %v3063_v31 = vld [vmem:[%s4217_s10 + $0x90] sm:$0xff] }
 0xfaf   : > { %3353 = vmatpush3.xpose.msk.msra.mxu1 %vm732_vm2, %v2160_v24  ;;  %3354 = vmatprep.mubr.msk.f32.mxu1 %vm3612_vm0, %v3613_v10  ;;  %v3056_v24 = vld [vmem:[%s4215_s8 + $0x20] sm:$0xff] }
 0xfb0   : > { %3357 = vmatprep.subr.mxu1 %v3613_v10  ;;  %v3500_v26 = vpack.c.bf16 %v3057_v25, %v3056_v24 }
 0xfb2   : > { %3355 = vmatmul.mubr.msk.f32.vlgmr.msra.gmra.mrb[24].mxu1 %vm732_vm2, %v2158_v27  ;;  %v3059_v27 = vld [vmem:[%s4215_s8 + $0x38] sm:$0xff] }
 0xfb3   : > { %3359 = vmatprep.mubr.msk.f32.mxu1 %vm3612_vm0, %v3613_v10 }
0x107f   : > { %v2396_v32 = vpop.f32.mrb[10].mxu0 }
0x1080   : > { %v3366_v33 = vpop.f32.mrb[11].mxu0  ;;  %v2400_v34 = vsel %vm732_vm2, %v2396_v32, -inf }
0x1081   : > { %2401 = vmax.xlane.f32.xlu1 %v2400_v34  ;;  %v2153_v35 = vpop.f32.mrb[22].mxu1  ;;  %v3064_v33 = vld [vmem:[%s4217_s10 + $0x98] sm:$0xff] }
0x1082   : > { %v3351_v36 = vpop.f32.mrb[23].mxu1  ;;  %v3509_v34 = vpack.c.bf16 %v3064_v33, %v3063_v31 }
0x1083   : > { %v3066_v36 = vld [vmem:[%s4217_s10 + $0xa8] sm:$0xff] }
0x1085   : > { %v2231_v37 = vpop.f32.mrb[24].mxu1 }
0x1086   : > { %v3356_v38 = vpop.f32.mrb[25].mxu1  ;;  %v2235_v39 = vsel %vm732_vm2, %v2231_v37, -inf }
0x1087   : > { %2236 = vmax.xlane.f32.xlu0 %v2235_v39  ;;  %v3067_v38 = vld [vmem:[%s4217_s10 + $0xb0] sm:$0xff]  ;;  %v3068_v39 = vld [vmem:[%s4217_s10 + $0xb8] sm:$0xff] }
0x1092   : > { %2246 = vrot.lane.b32.xlu1 %v3991_v57, %s4245_s27 }
0x1096   : > { %2488 = vrot.lane.b32.xlu1 %v2153_v35, %s4246_s2  ;;  %v3065_v35 = vld [vmem:[%s4217_s10 + $0xa0] sm:$0xff] }
0x110e   : > { %v2402_v40 = vpop.xlane.xlu1 %2401 }
0x110f   : > { %v2403_v41 = vsub.f32 %v2396_v32, %v2402_v40  ;;  %v3506_v32 = vpack.c.bf16 %v3062_v30, %v3061_v29  ;;  %v3515_v40 = vpack.c.bf16 %v3068_v39, %v3067_v38  ;;  %v2876_v29 = vld [vmem:[%s4223_s16 + $0x8] sm:$0xff]  ;;  %v2879_v39 = vld [vmem:[#allocation2] sm:$0x1] }
0x1111   : > { %v2404_v42 = vmul.f32 1.442695, %v2403_v41  ;;  %v3069_v41 = vld [vmem:[%s4217_s10 + $0xc0] sm:$0xff] }
0x1112   : > { %v2247_v43 = vpop.permute.xlu1 %2246 }
0x1113   : > { %3590 = vpow2.f32 %v2404_v42  ;;  %3358 = vmatpush3.msra.mxu1 %v2247_v43  ;;  %v3070_v42 = vld [vmem:[%s4217_s10 + $0xc8] sm:$0xff] }
0x1114   : > { %v2237_v44 = vpop.xlane.xlu0 %2236  ;;  %3367 = vmatprep.subr.mxu1 %v3613_v10  ;;  %v3518_v43 = vpack.c.bf16 %v3070_v42, %v3069_v41 }
0x1115   : > { %v2238_v45 = vsub.f32 %v2231_v37, %v2237_v44  ;;  %v3512_v37 = vpack.c.bf16 %v3066_v36, %v3065_v35  ;;  %v3071_v44 = vld [vmem:[%s4217_s10 + $0xd0] sm:$0xff]  ;;  %v2878_v35 = vld [vmem:[%s4223_s16 + $0x18] sm:$0xff] }
0x1116   : > { %v2489_v5 = vpop.permute.xlu1 %2488 }
0x1117   : > { %v2239_v46 = vmul.f32 1.442695, %v2238_v45  ;;  %v2499_v7 = vsel %vm732_vm2, %v4017_v13, %v2489_v5  ;;  %v3072_v45 = vld [vmem:[%s4217_s10 + $0xd8] sm:$0xff] }
0x1119   : > { %3592 = vpow2.f32 %v2239_v46  ;;  %v3521_v46 = vpack.c.bf16 %v3072_v45, %v3071_v44 }
0x111d   : > { %v3591_v47 = vpop.eup %3590 }
0x111e   : > { %v2406_v48 = vsel %vm732_vm2, %v3591_v47, 0.0 }
0x111f   : > { %2407 = vadd.xlane.f32.xlu0 %v2406_v48  ;;  %v3074_v48 = vld [vmem:[%s4217_s10 + $0xe8] sm:$0xff] }
0x1123   : > { %v3593_v49 = vpop.eup %3592 }
0x1124   : > { %v2241_v50 = vsel %vm732_vm2, %v3593_v49, 0.0 }
0x1125   : > { %2242 = vadd.xlane.f32.xlu0 %v2241_v50 }
0x113b   : > { %2411 = vrot.lane.b32.xlu0 %v3991_v57, %s4247_s24  ;;  %v3051_v57 = vld [vmem:[%s4213_s6 + $0x20] sm:$0xff] }
0x113c   : > { %v3494_v60 = vpack.c.bf16 %v3052_v59, %v3051_v57  ;;  %v3075_v59 = vld [vmem:[%s4217_s10 + $0xf0] sm:$0xff] }
0x113e   : > { %3495 = vmatpush3.bf16.msra.mxu0 %v3494_v60  ;;  %v3076_v60 = vld [vmem:[%s4217_s10 + $0xf8] sm:$0xff] }
0x113f   : > { %3496 = vmatprep.subr.bf16.mxu0 %v3611_v4  ;;  %v3527_v61 = vpack.c.bf16 %v3076_v60, %v3075_v59 }
0x1142   : > { %3498 = vmatpush3.bf16.msra.mxu0 %v3497_v63 }
0x1143   : > { %3505 = vmatprep.subr.bf16.mxu0 %v3611_v4 }
0x11ac   : > { %v2408_v17 = vpop.xlane.xlu0 %2407 }
0x11b2   : > { %v2243_v51 = vpop.xlane.xlu0 %2242 }
0x11b3   : > { %3594 = vrcp.f32 %v2243_v51 }
0x11b4   : > { %3596 = vrcp.f32 %v2408_v17 }
0x11b6   : > { %v2412_v56 = vpop.permute.xlu0 %2411 }
0x11bd   : > { %v3595_v52 = vpop.eup %3594 }
0x11be   : > { %v2245_v53 = vmul.f32 %v3595_v52, %v3593_v49  ;;  %v3597_v55 = vpop.eup %3596 }
0x11bf   : > { %v2410_v58 = vmul.f32 %v3597_v55, %v3591_v47  ;;  %v3073_v47 = vld [vmem:[%s4217_s10 + $0xe0] sm:$0xff] }
0x11c0   : > { %3360 = vmatmul.mubr.msk.f32.vlgmr.msra.gmra.mrb[26].mxu1 %vm732_vm2, %v2245_v53  ;;  %v3524_v49 = vpack.c.bf16 %v3074_v48, %v3073_v47  ;;  %v3098_v53 = vld [vmem:[%s4219_s12 + $0x1] ss:$0 sm:$0xff] }
0x11c1   : > { %3368 = vmatpush3.msra.mxu1 %v2412_v56  ;;  %3369 = vmatprep.mubr.msk.f32.mxu1 %vm3612_vm0, %v3613_v10  ;;  %v3099_v56 = vld [vmem:[%s4220_s13 + $0x1] ss:$0 sm:$0xff] }
0x11c2   : > { %3499 = vmatprep.subr.bf16.mxu1 %v3611_v4 }
0x11c4   : > { %3370 = vmatmul.mubr.msk.f32.vlgmr.msra.gmra.mrb[28].mxu1 %vm732_vm2, %v2410_v58 }
0x11c5   : > { %3391 = vmatprep.mubr.msk.f32.mxu1 %vm3612_vm0, %v3613_v10  ;;  %3501 = vmatpush3.bf16.msra.mxu1 %v3500_v26  ;;  %v3103_v26 = vld [vmem:[%s4221_s14 + $0x1] ss:$0 sm:$0xff] }
0x11c6   : > { %3502 = vmatprep.subr.bf16.mxu1 %v3611_v4 }
0x1293   : > { %v2318_v0 = vpop.f32.mrb[26].mxu1 }
0x1294   : > { %2492 = vrot.lane.b32.xlu1 %v2318_v0, %s4248_s26  ;;  %v3361_v1 = vpop.f32.mrb[27].mxu1 }
0x1297   : > { %v2483_v2 = vpop.f32.mrb[28].mxu1 }
0x1298   : > { %2496 = vrot.lane.b32.xlu0 %v2483_v2, %s4249_s28  ;;  %v3371_v3 = vpop.f32.mrb[29].mxu1 }
0x1299   : > { %v3102_v3 = vld [vmem:[%s4218_s11 + $0x1] ss:$0 sm:$0xff] }
0x1306   : > { %v2493_v6 = vpop.permute.xlu1 %2492 }
0x1307   : > { %v2500_v8 = vsel %vm1403_vm3, %v2499_v7, %v2493_v6 }
0x130a   : > { %v2497_v9 = vpop.permute.xlu0 %2496 }
0x130b   : > { %v2501_v11 = vsel %vm1405_vm4, %v2500_v8, %v2497_v9 }
0x130c   : > { %3381 = vmatmul.mubr.msk.f32.vlgmr.msra.gmra.mrb[12].mxu0 %vm654_vm1, %v2501_v11 }
0x130d   : > { %3426 = vmatprep.mubr.msk.f32.mxu0 %vm3612_vm0, %v3613_v10  ;;  %3507 = vmatpush3.bf16.msra.mxu0 %v3506_v32 }
0x130e   : > { %3508 = vmatprep.subr.bf16.mxu0 %v3611_v4 }
0x1311   : > { %3510 = vmatpush3.bf16.msra.mxu0 %v3509_v34  ;;  %v2877_v34 = vld [vmem:[%s4223_s16 + $0x10] sm:$0xff] }
0x1312   : > { %3511 = vmatprep.subr.bf16.mxu0 %v3611_v4  ;;  %v3533_v36 = vpack.c.bf16 %v2878_v35, %v2877_v34 }
0x1315   : > { %3513 = vmatpush3.bf16.msra.mxu0 %v3512_v37 }
0x1316   : > { %3514 = vmatprep.subr.bf16.mxu0 %v3611_v4 }
0x1319   : > { %3516 = vmatpush3.bf16.msra.mxu0 %v3515_v40 }
0x131a   : > { %3517 = vmatprep.subr.bf16.mxu0 %v3611_v4 }
0x131d   : > { %3519 = vmatpush3.bf16.msra.mxu0 %v3518_v43 }
0x131e   : > { %3520 = vmatprep.subr.bf16.mxu0 %v3611_v4 }
0x1321   : > { %3522 = vmatpush3.bf16.msra.mxu0 %v3521_v46 }
0x1322   : > { %3523 = vmatprep.subr.bf16.mxu0 %v3611_v4 }
0x1325   : > { %3525 = vmatpush3.bf16.msra.mxu0 %v3524_v49 }
0x1326   : > { %3526 = vmatprep.subr.bf16.mxu0 %v3611_v4 }
0x1329   : > { %3528 = vmatpush3.bf16.msra.mxu0 %v3527_v61 }
0x13df   : > { %v2577_v14 = vpop.f32.mrb[12].mxu0 }
0x13e0   : > { %v2578_v15 = vadd.f32 %v3096_v12, %v2577_v14  ;;  %v3382_v16 = vpop.f32.mrb[13].mxu0 }
0x13e2   : > { %v2581_v18 = vadd.f32 %v2578_v15, %v3982_v54  ;;  %v3058_v54 = vld [vmem:[%s4215_s8 + $0x30] sm:$0xff] }
0x13e3   : > { %v3503_v28 = vpack.c.bf16 %v3059_v27, %v3058_v54  ;;  %v3104_v27 = vld [vmem:[%s4222_s15 + $0x1] ss:$0 sm:$0xff] }
0x13e4   : > { %v2582_v13 = vsel %vm654_vm1, %v2581_v18, 0.0 }
0x13e5   : > { %2583 = vadd.xlane.f32.xlu1 %v2582_v13  ;;  %3504 = vmatpush3.bf16.msra.mxu1 %v3503_v28  ;;  %v2875_v28 = vld [vmem:[%s4223_s16] sm:$0xff] }
0x13e6   : > { %3429 = vmatprep.subr.mxu1 %v3613_v10  ;;  %v3530_v33 = vpack.c.bf16 %v2876_v29, %v2875_v28 }
0x1472   : > { %v2584_v19 = vpop.xlane.xlu1 %2583 }
0x1473   : > { %v2585_v20 = vmul.f32 0.03125, %v2584_v19  ;;  %v2793_v19 = vlaneseq }
0x1475   : > { %v2586_v21 = vsub.f32 %v2581_v18, %v2585_v20 }
0x1477   : > { %v2587_v22 = vmul.f32 %v2586_v21, %v2586_v21 }
0x1479   : > { %v2588_v23 = vsel %vm654_vm1, %v2587_v22, 0.0 }
0x147a   : > { %2589 = vadd.xlane.f32.xlu0 %v2588_v23  ;;  %v2796_v23 = vand.u32 127, %v2793_v19 }
0x1507   : > { %v2590_v50 = vpop.xlane.xlu0 %2589 }
0x1508   : > { %v2591_v17 = vmul.f32 0.03125, %v2590_v50 }
0x150a   : > { %v2592_v51 = vadd.f32 1e-05, %v2591_v17 }
0x150c   : > { %3598 = vrsqrt.f32 %v2592_v51 }
0x1516   : > { %v3599_v52 = vpop.eup %3598 }
0x1517   : > { %v2594_v55 = vmul.f32 %v3599_v52, %v2586_v21  ;;  %v2794_v21 = vshrl.u32 %v2793_v19, 7 }
0x1519   : > { %v2601_v58 = vmul.f32 %v3098_v53, %v2594_v55  ;;  %v2797_v22 = vmul.u32 8, %v2794_v21 }
0x151b   : > { %v2608_v57 = vadd.f32 %v3099_v56, %v2601_v58  ;;  %v2798_v24 = vadd.s32 7, %v2797_v22 }
0x151d   : > { %3392 = vmatmul.mubr.msk.f32.vlgmr.msra.gmra.mrb[30].mxu1 %vm654_vm1, %v2608_v57  ;;  %vm2799_vm5 = vcmp.eq.s32.totalorder %v2796_v23, %v2798_v24 }
0x151e   : > { %3431 = vmatprep.mubr.msk.f32.mxu1 %vm3612_vm0, %v3613_v10  ;;  %v3105_v32 = vsel %vm2799_vm5, 1.0, %v3613_v10 }
0x15f0   : > { %v2684_v63 = vpop.f32.mrb[30].mxu1 }
0x15f1   : > { %v2685_v0 = vadd.f32 %v3100_v62, %v2684_v63  ;;  %v3393_v1 = vpop.f32.mrb[31].mxu1 }
0x15f3   : > { %v2688_v2 = vmax.f32 %v2685_v0, 0.0 }
0x15f5   : > { %3427 = vmatmul.mubr.f32.vlgmr.msra.gmra.mrb[14].mxu0 %v2688_v2 }
0x16c8   : > { %v2761_v5 = vpop.f32.mrb[14].mxu0 }
0x16c9   : > { %v2762_v6 = vadd.f32 %v3102_v3, %v2761_v5  ;;  %v3428_v7 = vpop.f32.mrb[15].mxu0 }
0x16cb   : > { %v2765_v8 = vadd.f32 %v2762_v6, %v2608_v57 }
0x16cd   : > { %v2766_v9 = vsel %vm654_vm1, %v2765_v8, 0.0 }
0x16ce   : > { %2767 = vadd.xlane.f32.xlu0 %v2766_v9 }
0x175b   : > { %v2768_v11 = vpop.xlane.xlu0 %2767 }
0x175c   : > { %v2769_v12 = vmul.f32 0.03125, %v2768_v11 }
0x175e   : > { %v2770_v14 = vsub.f32 %v2765_v8, %v2769_v12 }
0x1760   : > { %v2771_v15 = vmul.f32 %v2770_v14, %v2770_v14 }
0x1762   : > { %v2772_v16 = vsel %vm654_vm1, %v2771_v15, 0.0 }
0x1763   : > { %2773 = vadd.xlane.f32.xlu1 %v2772_v16 }
0x17f0   : > { %v2774_v18 = vpop.xlane.xlu1 %2773 }
0x17f1   : > { %v2775_v13 = vmul.f32 0.03125, %v2774_v18 }
0x17f3   : > { %v2776_v20 = vadd.f32 1e-05, %v2775_v13 }
0x17f5   : > { %3600 = vrsqrt.f32 %v2776_v20 }
0x17ff   : > { %v3601_v25 = vpop.eup %3600 }
0x1800   : > { %v2778_v54 = vmul.f32 %v3601_v25, %v2770_v14 }
0x1802   : > { %v2785_v30 = vmul.f32 %v3103_v26, %v2778_v54 }
0x1804   : > { %v2792_v31 = vadd.f32 %v3104_v27, %v2785_v30 }
0x1806   : > { %3430 = vmatpush3.msra.mxu1 %v2792_v31 }
0x1807   : > { %3432 = vmatmul.mubr.msk.f32.vlgmr.msra.gmra.mrb[32].mxu1 %vm732_vm2, %v3105_v32  ;;  %3529 = vmatprep.subr.bf16.mxu1 %v3611_v4 }
0x1808   : > { %3531 = vmatpush3.bf16.msra.mxu1 %v3530_v33  ;;  %3442 = vmatprep.mubr.msk.f32.mxu1 %vm3612_vm0, %v3613_v10 }
0x1809   : > { %3532 = vmatprep.subr.bf16.mxu1 %v3611_v4 }
0x180c   : > { %3534 = vmatpush3.bf16.msra.mxu1 %v3533_v36 }
0x18da   : > { %v2871_v37 = vpop.f32.mrb[32].mxu1 }
0x18db   : > { %v3433_v38 = vpop.f32.mrb[33].mxu1  ;;  %3443 = vmatmul.mubr.msk.f32.vlgmr.msra.gmra.mrb[34].mxu1 %vm654_vm1, %v2871_v37 }
0x19ae   : > { %v2949_v40 = vpop.f32.mrb[34].mxu1 }
0x19af   : > { %v2950_v41 = vadd.f32 %v2949_v40, %v2879_v39  ;;  %v3444_v42 = vpop.f32.mrb[35].mxu1 }
0x19b1   : > { %2954 = vst.msk [vmem:[%s587_s22] sm:$0x1] %vm2953_vm6, %v2950_v41 }
0x19b2 PF: > { %s30_s29 = sadd.s32 1, %s3608_s29  }
0x19b3   : > { %p27_p4 = scmp.ge.s32.totalorder %s30_s29, 4  }
0x19b5   :  { %29 = sbr.rel (!%p27_p4) target bundleno = 4 (0x4), region = 137 }

</bundles_post_ra>
